<compile_context>
chip_gen: v5e
topology: v5e:2x2
jax: 0.10.0
libtpu: 0.0.40
codegen_flags: <defaults>
</compile_context>

<pallas_src>
import functools

import jax
import jax.numpy as jnp
from jax import lax
from jax.experimental import pallas as pl
from jax.experimental.pallas import tpu as pltpu

N_BATCH = 2
IMG = 28
K = 5
C1_OUT, C2_OUT = 10, 20
CONV1_HW = IMG - K + 1          # 24
POOL1_HW = CONV1_HW // 2        # 12
CONV2_HW = POOL1_HW - K + 1     # 8
POOL2_HW = CONV2_HW // 2        # 4
FEAT = C2_OUT * POOL2_HW * POOL2_HW   # 320
FC1_OUT = 50
N_CLASSES = 10


def lenet_kernel(x_ref, t1_ref, b1_ref, t2_ref, b2_ref,
                 fc1w_ref, fc1b_ref, fc2w_ref, fc2b_ref, out_ref):
    x = x_ref[...]                                   # (N, 28, 28) f32
    n = x.shape[0]

    # ---- conv1: ONE MXU matmul (width taps folded into host Toeplitz T1) ----
    # xcat[(n,i), ki*28 + c] = x[n, i+ki, c];  T1[ki*28+c, j*10+oc] encodes the
    # 5x5 filter, so c1[(n,i), j*10+oc] = conv1 output (channels in lanes).
    xcat = jnp.concatenate([x[:, ki:ki + CONV1_HW, :] for ki in range(K)],
                           axis=-1)                               # (N, 24, 140)
    c1 = jnp.dot(xcat.reshape(n * CONV1_HW, K * IMG), t1_ref[...],
                 preferred_element_type=jnp.float32) + b1_ref[...]   # (48, 240)
    c1 = c1.reshape(n, CONV1_HW, CONV1_HW * C1_OUT)                  # (N,24,240)

    # ---- max_pool2d(2) + relu (rows pairwise, then lane groups of 10) --------
    rows = [jnp.maximum(c1[:, 2 * p, :], c1[:, 2 * p + 1, :])
            for p in range(POOL1_HW)]                                # 12x (N,240)
    h = jnp.stack(rows, axis=1)                                      # (N,12,240)
    cols = [jnp.maximum(h[:, :, 20 * q:20 * q + 10],
                        h[:, :, 20 * q + 10:20 * q + 20])
            for q in range(POOL1_HW)]
    p1 = jnp.maximum(jnp.concatenate(cols, axis=-1), 0.0)            # (N,12,120)

    # ---- conv2: ONE MXU matmul (Toeplitz slab T2, useful K = 250) ------------
    # TODO(synk): nn.Dropout2d(drop_prob) after conv2 has no deterministic
    # equivalent; implemented as identity (eval / inference semantics).
    lhs2 = jnp.concatenate([p1[:, ki:ki + CONV2_HW, :] for ki in range(K)],
                           axis=-1)                                  # (N, 8, 600)
    c2 = jnp.dot(lhs2.reshape(n * CONV2_HW, K * POOL1_HW * C1_OUT), t2_ref[...],
                 preferred_element_type=jnp.float32) + b2_ref[...]   # (16, 160)
    c2 = c2.reshape(n, CONV2_HW, CONV2_HW * C2_OUT)                  # (N,8,160)

    # ---- max_pool2d(2) + relu (rows pairwise, then lane groups of 20) --------
    rows2 = [jnp.maximum(c2[:, 2 * p, :], c2[:, 2 * p + 1, :])
             for p in range(POOL2_HW)]                               # 4x (N,160)
    h2 = jnp.stack(rows2, axis=1)                                    # (N,4,160)
    cols2 = [jnp.maximum(h2[:, :, 40 * q:40 * q + 20],
                         h2[:, :, 40 * q + 20:40 * q + 40])
             for q in range(POOL2_HW)]
    p2 = jnp.maximum(jnp.concatenate(cols2, axis=-1), 0.0)           # (N,4,80)

    # ---- flatten (folded into host-permuted fc1 weights) + fc1 + relu --------
    feat = jnp.concatenate([p2[:, xp, :] for xp in range(POOL2_HW)],
                           axis=-1)                                  # (N, 320)
    h1 = jnp.maximum(
        jnp.dot(feat, fc1w_ref[...], preferred_element_type=jnp.float32)
        + fc1b_ref[...], 0.0)                                        # (N, 50)
    # TODO(synk): F.dropout(x, training=self.training) is identity in eval mode.

    # ---- fc2 + log_softmax(dim=1) --------------------------------------------
    logits = (jnp.dot(h1, fc2w_ref[...], preferred_element_type=jnp.float32)
              + fc2b_ref[...])                                       # (N, 10)
    mx = jnp.max(logits, axis=1, keepdims=True)
    shifted = logits - mx
    lse = jnp.log(jnp.sum(jnp.exp(shifted), axis=1, keepdims=True))
    out_ref[...] = shifted - lse


def prepare_kernel_params(p):
    """Host-side layout plumbing: conv filters -> Toeplitz matmul slabs."""
    # conv1 slab T1: (140, 240).  T1[ki*28+c, j*10+oc] = w1[oc,0,ki,c-j] (else 0).
    w1 = p["conv1_w"]                                                # (10,1,5,5)
    t1_blocks = []
    for ki in range(K):
        blk = jnp.zeros((IMG, CONV1_HW, C1_OUT), jnp.float32)        # (28,24,10)
        for kj in range(K):
            ind = jnp.eye(IMG, CONV1_HW, k=-kj, dtype=jnp.float32)   # c == j+kj
            blk = blk + ind[:, :, None] * w1[:, 0, ki, kj][None, None, :]
        t1_blocks.append(blk)
    t1 = jnp.stack(t1_blocks, axis=0).reshape(K * IMG, CONV1_HW * C1_OUT)
    b1 = jnp.tile(p["conv1_b"], CONV1_HW).reshape(1, CONV1_HW * C1_OUT)

    # conv2 slab T2: (600, 160).  T2[ki*120+c*10+ic, y*20+oc] = w2[oc,ic,ki,c-y].
    w2 = p["conv2_w"]                                                # (20,10,5,5)
    t2_blocks = []
    for ki in range(K):
        blk = jnp.zeros((POOL1_HW, C1_OUT, CONV2_HW, C2_OUT), jnp.float32)
        for kj in range(K):
            ind = jnp.eye(POOL1_HW, CONV2_HW, k=-kj, dtype=jnp.float32)  # c==y+kj
            blk = blk + (ind[:, None, :, None] *
                         jnp.transpose(w2[:, :, ki, kj])[None, :, None, :])
        t2_blocks.append(blk)
    t2 = jnp.stack(t2_blocks, axis=0).reshape(K * POOL1_HW * C1_OUT,
                                              CONV2_HW * C2_OUT)
    b2 = jnp.tile(p["conv2_b"], CONV2_HW).reshape(1, CONV2_HW * C2_OUT)

    # fc1: canonical rows are (oc, h, w) from view(-1, 320); regroup to the
    # kernel's lane order (xp, q, oc) so the flatten is free in-kernel.
    w1t = jnp.transpose(p["fc1_w"])                                  # (320, 50)
    fc1w = jnp.transpose(
        w1t.reshape(C2_OUT, POOL2_HW, POOL2_HW, FC1_OUT), (1, 2, 0, 3)
    ).reshape(FEAT, FC1_OUT)                                         # (320, 50)
    fc1b = p["fc1_b"].reshape(1, FC1_OUT)
    fc2w = jnp.transpose(p["fc2_w"])                                 # (50, 10)
    fc2b = p["fc2_b"].reshape(1, N_CLASSES)
    return (t1, b1, t2, b2, fc1w, fc1b, fc2w, fc2b)


def lenet_forward(x_nchw, params):
    x = x_nchw[:, 0, :, :]                           # squeeze C=1 -> (N, 28, 28)
    n = x.shape[0]
    kp = prepare_kernel_params(params)
    vmem = functools.partial(pl.BlockSpec, memory_space=pltpu.MemorySpace.VMEM)
    return pl.pallas_call(
        lenet_kernel,
        out_shape=jax.ShapeDtypeStruct((n, N_CLASSES), jnp.float32),
        in_specs=[vmem()] * 9,
        out_specs=vmem(),
    )(x, *kp)


def init_params(key):
    ks = jax.random.split(key, 8)

    def u(k, shape, fan_in):
        bound = 1.0 / float(fan_in) ** 0.5
        return jax.random.uniform(k, shape, jnp.float32, -bound, bound)

    return dict(
        conv1_w=u(ks[0], (C1_OUT, 1, K, K), K * K),
        conv1_b=u(ks[1], (C1_OUT,), K * K),
        conv2_w=u(ks[2], (C2_OUT, C1_OUT, K, K), C1_OUT * K * K),
        conv2_b=u(ks[3], (C2_OUT,), C1_OUT * K * K),
        fc1_w=u(ks[4], (FC1_OUT, FEAT), FEAT),
        fc1_b=u(ks[5], (FC1_OUT,), FEAT),
        fc2_w=u(ks[6], (N_CLASSES, FC1_OUT), FC1_OUT),
        fc2_b=u(ks[7], (N_CLASSES,), FC1_OUT),
    )


def reference(x_nchw, p):
    """Pure-JAX reference matching the PyTorch forward (dropouts = identity)."""
    dn = ("NCHW", "OIHW", "NCHW")

    def pool2x2(a):
        n, c, h, w = a.shape
        return a.reshape(n, c, h // 2, 2, w // 2, 2).max(axis=(3, 5))

    c1 = lax.conv_general_dilated(x_nchw, p["conv1_w"], (1, 1), "VALID",
                                  dimension_numbers=dn)
    c1 = c1 + p["conv1_b"][None, :, None, None]
    r1 = jnp.maximum(pool2x2(c1), 0.0)
    c2 = lax.conv_general_dilated(r1, p["conv2_w"], (1, 1), "VALID",
                                  dimension_numbers=dn)
    c2 = c2 + p["conv2_b"][None, :, None, None]
    r2 = jnp.maximum(pool2x2(c2), 0.0)
    feat = r2.reshape(x_nchw.shape[0], FEAT)              # view(-1, 320)
    h = jnp.maximum(feat @ p["fc1_w"].T + p["fc1_b"], 0.0)
    logits = h @ p["fc2_w"].T + p["fc2_b"]
    return jax.nn.log_softmax(logits, axis=1)


if __name__ == "__main__":
    key = jax.random.PRNGKey(0)
    kx, kp = jax.random.split(key)
    x = jax.random.normal(kx, (N_BATCH, 1, IMG, IMG), jnp.float32)   # NCHW, C=1
    params = init_params(kp)

    out = jax.block_until_ready(lenet_forward(x, params))
    ref = jax.block_until_ready(reference(x, params))

    assert out.shape == (N_BATCH, N_CLASSES)
    assert bool(jnp.allclose(out, ref, atol=1e-4, rtol=1e-4)), "mismatch vs reference"
    print("KERNEL_OK")
</pallas_src>

<mosaic_0001>
module attributes {stable_mosaic.version = 11 : i64} {
  func.func @lenet_kernel(%arg0: memref<2x28x28xf32, #tpu.memory_space<vmem>>, %arg1: memref<140x240xf32, #tpu.memory_space<vmem>>, %arg2: memref<1x240xf32, #tpu.memory_space<vmem>>, %arg3: memref<600x160xf32, #tpu.memory_space<vmem>>, %arg4: memref<1x160xf32, #tpu.memory_space<vmem>>, %arg5: memref<320x50xf32, #tpu.memory_space<vmem>>, %arg6: memref<1x50xf32, #tpu.memory_space<vmem>>, %arg7: memref<50x10xf32, #tpu.memory_space<vmem>>, %arg8: memref<1x10xf32, #tpu.memory_space<vmem>>, %arg9: memref<2x10xf32, #tpu.memory_space<vmem>>) attributes {dimension_semantics = [], scalar_prefetch = 0 : i64, scratch_operands = 0 : i64, tpu.core_type = #tpu.core_type<tc>} {
    %c0 = arith.constant 0 : index
    %c0_0 = arith.constant 0 : index
    %c0_1 = arith.constant 0 : index
    %0 = vector.load %arg0[%c0, %c0_0, %c0_1] : memref<2x28x28xf32, #tpu.memory_space<vmem>>, vector<2x28x28xf32>
    %1 = vector.extract_strided_slice %0 {offsets = [0, 0, 0], sizes = [2, 24, 28], strides = [1, 1, 1]} : vector<2x28x28xf32> to vector<2x24x28xf32>
    %2 = vector.extract_strided_slice %0 {offsets = [0, 1, 0], sizes = [2, 24, 28], strides = [1, 1, 1]} : vector<2x28x28xf32> to vector<2x24x28xf32>
    %3 = vector.extract_strided_slice %0 {offsets = [0, 2, 0], sizes = [2, 24, 28], strides = [1, 1, 1]} : vector<2x28x28xf32> to vector<2x24x28xf32>
    %4 = vector.extract_strided_slice %0 {offsets = [0, 3, 0], sizes = [2, 24, 28], strides = [1, 1, 1]} : vector<2x28x28xf32> to vector<2x24x28xf32>
    %5 = vector.extract_strided_slice %0 {offsets = [0, 4, 0], sizes = [2, 24, 28], strides = [1, 1, 1]} : vector<2x28x28xf32> to vector<2x24x28xf32>
    %6 = tpu.concatenate %1, %2, %3, %4, %5 in 2 : vector<2x24x28xf32>, vector<2x24x28xf32>, vector<2x24x28xf32>, vector<2x24x28xf32>, vector<2x24x28xf32> -> vector<2x24x140xf32>
    %7 = vector.shape_cast %6 : vector<2x24x140xf32> to vector<48x140xf32>
    %c0_2 = arith.constant 0 : index
    %c0_3 = arith.constant 0 : index
    %8 = vector.load %arg1[%c0_2, %c0_3] : memref<140x240xf32, #tpu.memory_space<vmem>>, vector<140x240xf32>
    %cst = arith.constant dense<0.000000e+00> : vector<48x240xf32>
    %9 = tpu.matmul %7, %8, %cst {dimension_numbers = #tpu.dot_dimension_numbers<[1], [0], [0], [1], [0, 0, 1, 1], [], []>} : vector<48x140xf32>, vector<140x240xf32>, vector<48x240xf32> -> vector<48x240xf32>
    %c0_4 = arith.constant 0 : index
    %c0_5 = arith.constant 0 : index
    %10 = vector.load %arg2[%c0_4, %c0_5] : memref<1x240xf32, #tpu.memory_space<vmem>>, vector<1x240xf32>
    %11 = vector.broadcast %10 : vector<1x240xf32> to vector<48x240xf32>
    %12 = arith.addf %9, %11 : vector<48x240xf32>
    %13 = vector.shape_cast %12 : vector<48x240xf32> to vector<2x24x240xf32>
    %14 = vector.extract_strided_slice %13 {offsets = [0, 0, 0], sizes = [2, 1, 240], strides = [1, 1, 1]} : vector<2x24x240xf32> to vector<2x1x240xf32>
    %15 = vector.shape_cast %14 : vector<2x1x240xf32> to vector<2x240xf32>
    %16 = vector.extract_strided_slice %13 {offsets = [0, 1, 0], sizes = [2, 1, 240], strides = [1, 1, 1]} : vector<2x24x240xf32> to vector<2x1x240xf32>
    %17 = vector.shape_cast %16 : vector<2x1x240xf32> to vector<2x240xf32>
    %18 = arith.maximumf %15, %17 : vector<2x240xf32>
    %19 = vector.extract_strided_slice %13 {offsets = [0, 2, 0], sizes = [2, 1, 240], strides = [1, 1, 1]} : vector<2x24x240xf32> to vector<2x1x240xf32>
    %20 = vector.shape_cast %19 : vector<2x1x240xf32> to vector<2x240xf32>
    %21 = vector.extract_strided_slice %13 {offsets = [0, 3, 0], sizes = [2, 1, 240], strides = [1, 1, 1]} : vector<2x24x240xf32> to vector<2x1x240xf32>
    %22 = vector.shape_cast %21 : vector<2x1x240xf32> to vector<2x240xf32>
    %23 = arith.maximumf %20, %22 : vector<2x240xf32>
    %24 = vector.extract_strided_slice %13 {offsets = [0, 4, 0], sizes = [2, 1, 240], strides = [1, 1, 1]} : vector<2x24x240xf32> to vector<2x1x240xf32>
    %25 = vector.shape_cast %24 : vector<2x1x240xf32> to vector<2x240xf32>
    %26 = vector.extract_strided_slice %13 {offsets = [0, 5, 0], sizes = [2, 1, 240], strides = [1, 1, 1]} : vector<2x24x240xf32> to vector<2x1x240xf32>
    %27 = vector.shape_cast %26 : vector<2x1x240xf32> to vector<2x240xf32>
    %28 = arith.maximumf %25, %27 : vector<2x240xf32>
    %29 = vector.extract_strided_slice %13 {offsets = [0, 6, 0], sizes = [2, 1, 240], strides = [1, 1, 1]} : vector<2x24x240xf32> to vector<2x1x240xf32>
    %30 = vector.shape_cast %29 : vector<2x1x240xf32> to vector<2x240xf32>
    %31 = vector.extract_strided_slice %13 {offsets = [0, 7, 0], sizes = [2, 1, 240], strides = [1, 1, 1]} : vector<2x24x240xf32> to vector<2x1x240xf32>
    %32 = vector.shape_cast %31 : vector<2x1x240xf32> to vector<2x240xf32>
    %33 = arith.maximumf %30, %32 : vector<2x240xf32>
    %34 = vector.extract_strided_slice %13 {offsets = [0, 8, 0], sizes = [2, 1, 240], strides = [1, 1, 1]} : vector<2x24x240xf32> to vector<2x1x240xf32>
    %35 = vector.shape_cast %34 : vector<2x1x240xf32> to vector<2x240xf32>
    %36 = vector.extract_strided_slice %13 {offsets = [0, 9, 0], sizes = [2, 1, 240], strides = [1, 1, 1]} : vector<2x24x240xf32> to vector<2x1x240xf32>
    %37 = vector.shape_cast %36 : vector<2x1x240xf32> to vector<2x240xf32>
    %38 = arith.maximumf %35, %37 : vector<2x240xf32>
    %39 = vector.extract_strided_slice %13 {offsets = [0, 10, 0], sizes = [2, 1, 240], strides = [1, 1, 1]} : vector<2x24x240xf32> to vector<2x1x240xf32>
    %40 = vector.shape_cast %39 : vector<2x1x240xf32> to vector<2x240xf32>
    %41 = vector.extract_strided_slice %13 {offsets = [0, 11, 0], sizes = [2, 1, 240], strides = [1, 1, 1]} : vector<2x24x240xf32> to vector<2x1x240xf32>
    %42 = vector.shape_cast %41 : vector<2x1x240xf32> to vector<2x240xf32>
    %43 = arith.maximumf %40, %42 : vector<2x240xf32>
    %44 = vector.extract_strided_slice %13 {offsets = [0, 12, 0], sizes = [2, 1, 240], strides = [1, 1, 1]} : vector<2x24x240xf32> to vector<2x1x240xf32>
    %45 = vector.shape_cast %44 : vector<2x1x240xf32> to vector<2x240xf32>
    %46 = vector.extract_strided_slice %13 {offsets = [0, 13, 0], sizes = [2, 1, 240], strides = [1, 1, 1]} : vector<2x24x240xf32> to vector<2x1x240xf32>
    %47 = vector.shape_cast %46 : vector<2x1x240xf32> to vector<2x240xf32>
    %48 = arith.maximumf %45, %47 : vector<2x240xf32>
    %49 = vector.extract_strided_slice %13 {offsets = [0, 14, 0], sizes = [2, 1, 240], strides = [1, 1, 1]} : vector<2x24x240xf32> to vector<2x1x240xf32>
    %50 = vector.shape_cast %49 : vector<2x1x240xf32> to vector<2x240xf32>
    %51 = vector.extract_strided_slice %13 {offsets = [0, 15, 0], sizes = [2, 1, 240], strides = [1, 1, 1]} : vector<2x24x240xf32> to vector<2x1x240xf32>
    %52 = vector.shape_cast %51 : vector<2x1x240xf32> to vector<2x240xf32>
    %53 = arith.maximumf %50, %52 : vector<2x240xf32>
    %54 = vector.extract_strided_slice %13 {offsets = [0, 16, 0], sizes = [2, 1, 240], strides = [1, 1, 1]} : vector<2x24x240xf32> to vector<2x1x240xf32>
    %55 = vector.shape_cast %54 : vector<2x1x240xf32> to vector<2x240xf32>
    %56 = vector.extract_strided_slice %13 {offsets = [0, 17, 0], sizes = [2, 1, 240], strides = [1, 1, 1]} : vector<2x24x240xf32> to vector<2x1x240xf32>
    %57 = vector.shape_cast %56 : vector<2x1x240xf32> to vector<2x240xf32>
    %58 = arith.maximumf %55, %57 : vector<2x240xf32>
    %59 = vector.extract_strided_slice %13 {offsets = [0, 18, 0], sizes = [2, 1, 240], strides = [1, 1, 1]} : vector<2x24x240xf32> to vector<2x1x240xf32>
    %60 = vector.shape_cast %59 : vector<2x1x240xf32> to vector<2x240xf32>
    %61 = vector.extract_strided_slice %13 {offsets = [0, 19, 0], sizes = [2, 1, 240], strides = [1, 1, 1]} : vector<2x24x240xf32> to vector<2x1x240xf32>
    %62 = vector.shape_cast %61 : vector<2x1x240xf32> to vector<2x240xf32>
    %63 = arith.maximumf %60, %62 : vector<2x240xf32>
    %64 = vector.extract_strided_slice %13 {offsets = [0, 20, 0], sizes = [2, 1, 240], strides = [1, 1, 1]} : vector<2x24x240xf32> to vector<2x1x240xf32>
    %65 = vector.shape_cast %64 : vector<2x1x240xf32> to vector<2x240xf32>
    %66 = vector.extract_strided_slice %13 {offsets = [0, 21, 0], sizes = [2, 1, 240], strides = [1, 1, 1]} : vector<2x24x240xf32> to vector<2x1x240xf32>
    %67 = vector.shape_cast %66 : vector<2x1x240xf32> to vector<2x240xf32>
    %68 = arith.maximumf %65, %67 : vector<2x240xf32>
    %69 = vector.extract_strided_slice %13 {offsets = [0, 22, 0], sizes = [2, 1, 240], strides = [1, 1, 1]} : vector<2x24x240xf32> to vector<2x1x240xf32>
    %70 = vector.shape_cast %69 : vector<2x1x240xf32> to vector<2x240xf32>
    %71 = vector.extract_strided_slice %13 {offsets = [0, 23, 0], sizes = [2, 1, 240], strides = [1, 1, 1]} : vector<2x24x240xf32> to vector<2x1x240xf32>
    %72 = vector.shape_cast %71 : vector<2x1x240xf32> to vector<2x240xf32>
    %73 = arith.maximumf %70, %72 : vector<2x240xf32>
    %74 = vector.shape_cast %18 : vector<2x240xf32> to vector<2x1x240xf32>
    %75 = vector.shape_cast %23 : vector<2x240xf32> to vector<2x1x240xf32>
    %76 = vector.shape_cast %28 : vector<2x240xf32> to vector<2x1x240xf32>
    %77 = vector.shape_cast %33 : vector<2x240xf32> to vector<2x1x240xf32>
    %78 = vector.shape_cast %38 : vector<2x240xf32> to vector<2x1x240xf32>
    %79 = vector.shape_cast %43 : vector<2x240xf32> to vector<2x1x240xf32>
    %80 = vector.shape_cast %48 : vector<2x240xf32> to vector<2x1x240xf32>
    %81 = vector.shape_cast %53 : vector<2x240xf32> to vector<2x1x240xf32>
    %82 = vector.shape_cast %58 : vector<2x240xf32> to vector<2x1x240xf32>
    %83 = vector.shape_cast %63 : vector<2x240xf32> to vector<2x1x240xf32>
    %84 = vector.shape_cast %68 : vector<2x240xf32> to vector<2x1x240xf32>
    %85 = vector.shape_cast %73 : vector<2x240xf32> to vector<2x1x240xf32>
    %86 = tpu.concatenate %74, %75, %76, %77, %78, %79, %80, %81, %82, %83, %84, %85 in 1 : vector<2x1x240xf32>, vector<2x1x240xf32>, vector<2x1x240xf32>, vector<2x1x240xf32>, vector<2x1x240xf32>, vector<2x1x240xf32>, vector<2x1x240xf32>, vector<2x1x240xf32>, vector<2x1x240xf32>, vector<2x1x240xf32>, vector<2x1x240xf32>, vector<2x1x240xf32> -> vector<2x12x240xf32>
    %87 = vector.extract_strided_slice %86 {offsets = [0, 0, 0], sizes = [2, 12, 10], strides = [1, 1, 1]} : vector<2x12x240xf32> to vector<2x12x10xf32>
    %88 = vector.extract_strided_slice %86 {offsets = [0, 0, 10], sizes = [2, 12, 10], strides = [1, 1, 1]} : vector<2x12x240xf32> to vector<2x12x10xf32>
    %89 = arith.maximumf %87, %88 : vector<2x12x10xf32>
    %90 = vector.extract_strided_slice %86 {offsets = [0, 0, 20], sizes = [2, 12, 10], strides = [1, 1, 1]} : vector<2x12x240xf32> to vector<2x12x10xf32>
    %91 = vector.extract_strided_slice %86 {offsets = [0, 0, 30], sizes = [2, 12, 10], strides = [1, 1, 1]} : vector<2x12x240xf32> to vector<2x12x10xf32>
    %92 = arith.maximumf %90, %91 : vector<2x12x10xf32>
    %93 = vector.extract_strided_slice %86 {offsets = [0, 0, 40], sizes = [2, 12, 10], strides = [1, 1, 1]} : vector<2x12x240xf32> to vector<2x12x10xf32>
    %94 = vector.extract_strided_slice %86 {offsets = [0, 0, 50], sizes = [2, 12, 10], strides = [1, 1, 1]} : vector<2x12x240xf32> to vector<2x12x10xf32>
    %95 = arith.maximumf %93, %94 : vector<2x12x10xf32>
    %96 = vector.extract_strided_slice %86 {offsets = [0, 0, 60], sizes = [2, 12, 10], strides = [1, 1, 1]} : vector<2x12x240xf32> to vector<2x12x10xf32>
    %97 = vector.extract_strided_slice %86 {offsets = [0, 0, 70], sizes = [2, 12, 10], strides = [1, 1, 1]} : vector<2x12x240xf32> to vector<2x12x10xf32>
    %98 = arith.maximumf %96, %97 : vector<2x12x10xf32>
    %99 = vector.extract_strided_slice %86 {offsets = [0, 0, 80], sizes = [2, 12, 10], strides = [1, 1, 1]} : vector<2x12x240xf32> to vector<2x12x10xf32>
    %100 = vector.extract_strided_slice %86 {offsets = [0, 0, 90], sizes = [2, 12, 10], strides = [1, 1, 1]} : vector<2x12x240xf32> to vector<2x12x10xf32>
    %101 = arith.maximumf %99, %100 : vector<2x12x10xf32>
    %102 = vector.extract_strided_slice %86 {offsets = [0, 0, 100], sizes = [2, 12, 10], strides = [1, 1, 1]} : vector<2x12x240xf32> to vector<2x12x10xf32>
    %103 = vector.extract_strided_slice %86 {offsets = [0, 0, 110], sizes = [2, 12, 10], strides = [1, 1, 1]} : vector<2x12x240xf32> to vector<2x12x10xf32>
    %104 = arith.maximumf %102, %103 : vector<2x12x10xf32>
    %105 = vector.extract_strided_slice %86 {offsets = [0, 0, 120], sizes = [2, 12, 10], strides = [1, 1, 1]} : vector<2x12x240xf32> to vector<2x12x10xf32>
    %106 = vector.extract_strided_slice %86 {offsets = [0, 0, 130], sizes = [2, 12, 10], strides = [1, 1, 1]} : vector<2x12x240xf32> to vector<2x12x10xf32>
    %107 = arith.maximumf %105, %106 : vector<2x12x10xf32>
    %108 = vector.extract_strided_slice %86 {offsets = [0, 0, 140], sizes = [2, 12, 10], strides = [1, 1, 1]} : vector<2x12x240xf32> to vector<2x12x10xf32>
    %109 = vector.extract_strided_slice %86 {offsets = [0, 0, 150], sizes = [2, 12, 10], strides = [1, 1, 1]} : vector<2x12x240xf32> to vector<2x12x10xf32>
    %110 = arith.maximumf %108, %109 : vector<2x12x10xf32>
    %111 = vector.extract_strided_slice %86 {offsets = [0, 0, 160], sizes = [2, 12, 10], strides = [1, 1, 1]} : vector<2x12x240xf32> to vector<2x12x10xf32>
    %112 = vector.extract_strided_slice %86 {offsets = [0, 0, 170], sizes = [2, 12, 10], strides = [1, 1, 1]} : vector<2x12x240xf32> to vector<2x12x10xf32>
    %113 = arith.maximumf %111, %112 : vector<2x12x10xf32>
    %114 = vector.extract_strided_slice %86 {offsets = [0, 0, 180], sizes = [2, 12, 10], strides = [1, 1, 1]} : vector<2x12x240xf32> to vector<2x12x10xf32>
    %115 = vector.extract_strided_slice %86 {offsets = [0, 0, 190], sizes = [2, 12, 10], strides = [1, 1, 1]} : vector<2x12x240xf32> to vector<2x12x10xf32>
    %116 = arith.maximumf %114, %115 : vector<2x12x10xf32>
    %117 = vector.extract_strided_slice %86 {offsets = [0, 0, 200], sizes = [2, 12, 10], strides = [1, 1, 1]} : vector<2x12x240xf32> to vector<2x12x10xf32>
    %118 = vector.extract_strided_slice %86 {offsets = [0, 0, 210], sizes = [2, 12, 10], strides = [1, 1, 1]} : vector<2x12x240xf32> to vector<2x12x10xf32>
    %119 = arith.maximumf %117, %118 : vector<2x12x10xf32>
    %120 = vector.extract_strided_slice %86 {offsets = [0, 0, 220], sizes = [2, 12, 10], strides = [1, 1, 1]} : vector<2x12x240xf32> to vector<2x12x10xf32>
    %121 = vector.extract_strided_slice %86 {offsets = [0, 0, 230], sizes = [2, 12, 10], strides = [1, 1, 1]} : vector<2x12x240xf32> to vector<2x12x10xf32>
    %122 = arith.maximumf %120, %121 : vector<2x12x10xf32>
    %123 = tpu.concatenate %89, %92, %95, %98, %101, %104, %107, %110, %113, %116, %119, %122 in 2 : vector<2x12x10xf32>, vector<2x12x10xf32>, vector<2x12x10xf32>, vector<2x12x10xf32>, vector<2x12x10xf32>, vector<2x12x10xf32>, vector<2x12x10xf32>, vector<2x12x10xf32>, vector<2x12x10xf32>, vector<2x12x10xf32>, vector<2x12x10xf32>, vector<2x12x10xf32> -> vector<2x12x120xf32>
    %cst_6 = arith.constant 0.000000e+00 : f32
    %124 = vector.broadcast %cst_6 : f32 to vector<2x12x120xf32>
    %125 = arith.maximumf %123, %124 : vector<2x12x120xf32>
    %126 = vector.extract_strided_slice %125 {offsets = [0, 0, 0], sizes = [2, 8, 120], strides = [1, 1, 1]} : vector<2x12x120xf32> to vector<2x8x120xf32>
    %127 = vector.extract_strided_slice %125 {offsets = [0, 1, 0], sizes = [2, 8, 120], strides = [1, 1, 1]} : vector<2x12x120xf32> to vector<2x8x120xf32>
    %128 = vector.extract_strided_slice %125 {offsets = [0, 2, 0], sizes = [2, 8, 120], strides = [1, 1, 1]} : vector<2x12x120xf32> to vector<2x8x120xf32>
    %129 = vector.extract_strided_slice %125 {offsets = [0, 3, 0], sizes = [2, 8, 120], strides = [1, 1, 1]} : vector<2x12x120xf32> to vector<2x8x120xf32>
    %130 = vector.extract_strided_slice %125 {offsets = [0, 4, 0], sizes = [2, 8, 120], strides = [1, 1, 1]} : vector<2x12x120xf32> to vector<2x8x120xf32>
    %131 = tpu.concatenate %126, %127, %128, %129, %130 in 2 : vector<2x8x120xf32>, vector<2x8x120xf32>, vector<2x8x120xf32>, vector<2x8x120xf32>, vector<2x8x120xf32> -> vector<2x8x600xf32>
    %132 = vector.shape_cast %131 : vector<2x8x600xf32> to vector<16x600xf32>
    %c0_7 = arith.constant 0 : index
    %c0_8 = arith.constant 0 : index
    %133 = vector.load %arg3[%c0_7, %c0_8] : memref<600x160xf32, #tpu.memory_space<vmem>>, vector<600x160xf32>
    %cst_9 = arith.constant dense<0.000000e+00> : vector<16x160xf32>
    %134 = tpu.matmul %132, %133, %cst_9 {dimension_numbers = #tpu.dot_dimension_numbers<[1], [0], [0], [1], [0, 0, 1, 1], [], []>} : vector<16x600xf32>, vector<600x160xf32>, vector<16x160xf32> -> vector<16x160xf32>
    %c0_10 = arith.constant 0 : index
    %c0_11 = arith.constant 0 : index
    %135 = vector.load %arg4[%c0_10, %c0_11] : memref<1x160xf32, #tpu.memory_space<vmem>>, vector<1x160xf32>
    %136 = vector.broadcast %135 : vector<1x160xf32> to vector<16x160xf32>
    %137 = arith.addf %134, %136 : vector<16x160xf32>
    %138 = vector.shape_cast %137 : vector<16x160xf32> to vector<2x8x160xf32>
    %139 = vector.extract_strided_slice %138 {offsets = [0, 0, 0], sizes = [2, 1, 160], strides = [1, 1, 1]} : vector<2x8x160xf32> to vector<2x1x160xf32>
    %140 = vector.shape_cast %139 : vector<2x1x160xf32> to vector<2x160xf32>
    %141 = vector.extract_strided_slice %138 {offsets = [0, 1, 0], sizes = [2, 1, 160], strides = [1, 1, 1]} : vector<2x8x160xf32> to vector<2x1x160xf32>
    %142 = vector.shape_cast %141 : vector<2x1x160xf32> to vector<2x160xf32>
    %143 = arith.maximumf %140, %142 : vector<2x160xf32>
    %144 = vector.extract_strided_slice %138 {offsets = [0, 2, 0], sizes = [2, 1, 160], strides = [1, 1, 1]} : vector<2x8x160xf32> to vector<2x1x160xf32>
    %145 = vector.shape_cast %144 : vector<2x1x160xf32> to vector<2x160xf32>
    %146 = vector.extract_strided_slice %138 {offsets = [0, 3, 0], sizes = [2, 1, 160], strides = [1, 1, 1]} : vector<2x8x160xf32> to vector<2x1x160xf32>
    %147 = vector.shape_cast %146 : vector<2x1x160xf32> to vector<2x160xf32>
    %148 = arith.maximumf %145, %147 : vector<2x160xf32>
    %149 = vector.extract_strided_slice %138 {offsets = [0, 4, 0], sizes = [2, 1, 160], strides = [1, 1, 1]} : vector<2x8x160xf32> to vector<2x1x160xf32>
    %150 = vector.shape_cast %149 : vector<2x1x160xf32> to vector<2x160xf32>
    %151 = vector.extract_strided_slice %138 {offsets = [0, 5, 0], sizes = [2, 1, 160], strides = [1, 1, 1]} : vector<2x8x160xf32> to vector<2x1x160xf32>
    %152 = vector.shape_cast %151 : vector<2x1x160xf32> to vector<2x160xf32>
    %153 = arith.maximumf %150, %152 : vector<2x160xf32>
    %154 = vector.extract_strided_slice %138 {offsets = [0, 6, 0], sizes = [2, 1, 160], strides = [1, 1, 1]} : vector<2x8x160xf32> to vector<2x1x160xf32>
    %155 = vector.shape_cast %154 : vector<2x1x160xf32> to vector<2x160xf32>
    %156 = vector.extract_strided_slice %138 {offsets = [0, 7, 0], sizes = [2, 1, 160], strides = [1, 1, 1]} : vector<2x8x160xf32> to vector<2x1x160xf32>
    %157 = vector.shape_cast %156 : vector<2x1x160xf32> to vector<2x160xf32>
    %158 = arith.maximumf %155, %157 : vector<2x160xf32>
    %159 = vector.shape_cast %143 : vector<2x160xf32> to vector<2x1x160xf32>
    %160 = vector.shape_cast %148 : vector<2x160xf32> to vector<2x1x160xf32>
    %161 = vector.shape_cast %153 : vector<2x160xf32> to vector<2x1x160xf32>
    %162 = vector.shape_cast %158 : vector<2x160xf32> to vector<2x1x160xf32>
    %163 = tpu.concatenate %159, %160, %161, %162 in 1 : vector<2x1x160xf32>, vector<2x1x160xf32>, vector<2x1x160xf32>, vector<2x1x160xf32> -> vector<2x4x160xf32>
    %164 = vector.extract_strided_slice %163 {offsets = [0, 0, 0], sizes = [2, 4, 20], strides = [1, 1, 1]} : vector<2x4x160xf32> to vector<2x4x20xf32>
    %165 = vector.extract_strided_slice %163 {offsets = [0, 0, 20], sizes = [2, 4, 20], strides = [1, 1, 1]} : vector<2x4x160xf32> to vector<2x4x20xf32>
    %166 = arith.maximumf %164, %165 : vector<2x4x20xf32>
    %167 = vector.extract_strided_slice %163 {offsets = [0, 0, 40], sizes = [2, 4, 20], strides = [1, 1, 1]} : vector<2x4x160xf32> to vector<2x4x20xf32>
    %168 = vector.extract_strided_slice %163 {offsets = [0, 0, 60], sizes = [2, 4, 20], strides = [1, 1, 1]} : vector<2x4x160xf32> to vector<2x4x20xf32>
    %169 = arith.maximumf %167, %168 : vector<2x4x20xf32>
    %170 = vector.extract_strided_slice %163 {offsets = [0, 0, 80], sizes = [2, 4, 20], strides = [1, 1, 1]} : vector<2x4x160xf32> to vector<2x4x20xf32>
    %171 = vector.extract_strided_slice %163 {offsets = [0, 0, 100], sizes = [2, 4, 20], strides = [1, 1, 1]} : vector<2x4x160xf32> to vector<2x4x20xf32>
    %172 = arith.maximumf %170, %171 : vector<2x4x20xf32>
    %173 = vector.extract_strided_slice %163 {offsets = [0, 0, 120], sizes = [2, 4, 20], strides = [1, 1, 1]} : vector<2x4x160xf32> to vector<2x4x20xf32>
    %174 = vector.extract_strided_slice %163 {offsets = [0, 0, 140], sizes = [2, 4, 20], strides = [1, 1, 1]} : vector<2x4x160xf32> to vector<2x4x20xf32>
    %175 = arith.maximumf %173, %174 : vector<2x4x20xf32>
    %176 = tpu.concatenate %166, %169, %172, %175 in 2 : vector<2x4x20xf32>, vector<2x4x20xf32>, vector<2x4x20xf32>, vector<2x4x20xf32> -> vector<2x4x80xf32>
    %cst_12 = arith.constant 0.000000e+00 : f32
    %177 = vector.broadcast %cst_12 : f32 to vector<2x4x80xf32>
    %178 = arith.maximumf %176, %177 : vector<2x4x80xf32>
    %179 = vector.extract_strided_slice %178 {offsets = [0, 0, 0], sizes = [2, 1, 80], strides = [1, 1, 1]} : vector<2x4x80xf32> to vector<2x1x80xf32>
    %180 = vector.shape_cast %179 : vector<2x1x80xf32> to vector<2x80xf32>
    %181 = vector.extract_strided_slice %178 {offsets = [0, 1, 0], sizes = [2, 1, 80], strides = [1, 1, 1]} : vector<2x4x80xf32> to vector<2x1x80xf32>
    %182 = vector.shape_cast %181 : vector<2x1x80xf32> to vector<2x80xf32>
    %183 = vector.extract_strided_slice %178 {offsets = [0, 2, 0], sizes = [2, 1, 80], strides = [1, 1, 1]} : vector<2x4x80xf32> to vector<2x1x80xf32>
    %184 = vector.shape_cast %183 : vector<2x1x80xf32> to vector<2x80xf32>
    %185 = vector.extract_strided_slice %178 {offsets = [0, 3, 0], sizes = [2, 1, 80], strides = [1, 1, 1]} : vector<2x4x80xf32> to vector<2x1x80xf32>
    %186 = vector.shape_cast %185 : vector<2x1x80xf32> to vector<2x80xf32>
    %187 = tpu.concatenate %180, %182, %184, %186 in 1 : vector<2x80xf32>, vector<2x80xf32>, vector<2x80xf32>, vector<2x80xf32> -> vector<2x320xf32>
    %c0_13 = arith.constant 0 : index
    %c0_14 = arith.constant 0 : index
    %188 = vector.load %arg5[%c0_13, %c0_14] : memref<320x50xf32, #tpu.memory_space<vmem>>, vector<320x50xf32>
    %cst_15 = arith.constant dense<0.000000e+00> : vector<2x50xf32>
    %189 = tpu.matmul %187, %188, %cst_15 {dimension_numbers = #tpu.dot_dimension_numbers<[1], [0], [0], [1], [0, 0, 1, 1], [], []>} : vector<2x320xf32>, vector<320x50xf32>, vector<2x50xf32> -> vector<2x50xf32>
    %c0_16 = arith.constant 0 : index
    %c0_17 = arith.constant 0 : index
    %190 = vector.load %arg6[%c0_16, %c0_17] : memref<1x50xf32, #tpu.memory_space<vmem>>, vector<1x50xf32>
    %191 = vector.broadcast %190 : vector<1x50xf32> to vector<2x50xf32>
    %192 = arith.addf %189, %191 : vector<2x50xf32>
    %cst_18 = arith.constant 0.000000e+00 : f32
    %193 = vector.broadcast %cst_18 : f32 to vector<2x50xf32>
    %194 = arith.maximumf %192, %193 : vector<2x50xf32>
    %c0_19 = arith.constant 0 : index
    %c0_20 = arith.constant 0 : index
    %195 = vector.load %arg7[%c0_19, %c0_20] : memref<50x10xf32, #tpu.memory_space<vmem>>, vector<50x10xf32>
    %cst_21 = arith.constant dense<0.000000e+00> : vector<2x10xf32>
    %196 = tpu.matmul %194, %195, %cst_21 {dimension_numbers = #tpu.dot_dimension_numbers<[1], [0], [0], [1], [0, 0, 1, 1], [], []>} : vector<2x50xf32>, vector<50x10xf32>, vector<2x10xf32> -> vector<2x10xf32>
    %c0_22 = arith.constant 0 : index
    %c0_23 = arith.constant 0 : index
    %197 = vector.load %arg8[%c0_22, %c0_23] : memref<1x10xf32, #tpu.memory_space<vmem>>, vector<1x10xf32>
    %198 = vector.broadcast %197 : vector<1x10xf32> to vector<2x10xf32>
    %199 = arith.addf %196, %198 : vector<2x10xf32>
    %cst_24 = arith.constant dense<0xFF800000> : vector<2xf32>
    %200 = vector.multi_reduction <maximumf>, %199, %cst_24 [1] : vector<2x10xf32> to vector<2xf32>
    %201 = vector.shape_cast %200 : vector<2xf32> to vector<2x1xf32>
    %202 = vector.broadcast %201 : vector<2x1xf32> to vector<2x10xf32>
    %203 = arith.subf %199, %202 : vector<2x10xf32>
    %204 = math.exp %203 : vector<2x10xf32>
    %cst_25 = arith.constant dense<0.000000e+00> : vector<2xf32>
    %205 = vector.multi_reduction <add>, %204, %cst_25 [1] : vector<2x10xf32> to vector<2xf32>
    %206 = vector.shape_cast %205 : vector<2xf32> to vector<2x1xf32>
    %207 = math.log %206 : vector<2x1xf32>
    %208 = vector.broadcast %207 : vector<2x1xf32> to vector<2x10xf32>
    %209 = arith.subf %203, %208 : vector<2x10xf32>
    %c0_26 = arith.constant 0 : index
    %c0_27 = arith.constant 0 : index
    %210 = vector.load %arg9[%c0_26, %c0_27] : memref<2x10xf32, #tpu.memory_space<vmem>>, vector<2x10xf32>
    tpu.vector_store %arg9[%c0_26, %c0_27], %209 {strides = array<i32>} : memref<2x10xf32, #tpu.memory_space<vmem>>, vector<2x10xf32>,
    return
  }
}

</mosaic_0001>

<bundles_post_ra>
// kernel: tpu_custom_call.1
= control target key start
LH: loop header
LB: loop body
LE: loop exit
PB: predicated region body
PF: predicated region fallthrough
CT: control target
= control target key end

     0   :  { %vm49_vm0 = vcmask 1046528   ;;  %vm115_vm1 = vcmask 1044480   ;;  %vm82_vm2 = vcmask 1045504   ;;  %s3012_s0 = inlined_call_operand.vmem [shape: f32[2,28,28], index: 0, kind: input, shape index: {}]   ;;  %s3013_s1 = inlined_call_operand.vmem [shape: f32[140,240], index: 1, kind: input, shape index: {}]   ;;  %s3014_s2 = inlined_call_operand.vmem [shape: f32[1,240], index: 2, kind: input, shape index: {}]   ;;  %s3015_s3 = inlined_call_operand.vmem [shape: f32[600,160], index: 3, kind: input, shape index: {}]   ;;  %s3016_s4 = inlined_call_operand.vmem [shape: f32[1,160], index: 4, kind: input, shape index: {}]   ;;  %s3017_s5 = inlined_call_operand.vmem [shape: f32[320,50], index: 5, kind: input, shape index: {}]   ;;  %s3018_s6 = inlined_call_operand.vmem [shape: f32[1,50], index: 6, kind: input, shape index: {}]   ;;  %s3019_s7 = inlined_call_operand.vmem [shape: f32[50,10], index: 7, kind: input, shape index: {}]   ;;  %s3020_s8 = inlined_call_operand.vmem [shape: f32[1,10], index: 8, kind: input, shape index: {}]   ;;  %s3021_s9 = inlined_call_operand.hbm [shape: f32[2,10], index: 9, kind: output, shape index: {}]  }
   0x1   :  { %v1806_v0 = vld [vmem:[%s3012_s0] sm:$0xff]  ;;  %v1811_v1 = vld [vmem:[%s3012_s0 + $0x8] sm:$0xff]  ;;  %v1816_v2 = vld [vmem:[%s3012_s0 + $0x10] sm:$0xff] }
   0x2   :  { %v50_v3 = vrot.slane %v1806_v0, 1  ;;  %v51_v4 = vrot.slane %v1811_v1, 1  ;;  %v53_v5 = vrot.slane %v1816_v2, 1  ;;  %v116_v6 = vrot.slane %v1806_v0, 3 }
   0x3   :  { %v117_v7 = vrot.slane %v1811_v1, 3  ;;  %v119_v8 = vrot.slane %v1816_v2, 3  ;;  %v83_v9 = vrot.slane %v1806_v0, 2  ;;  %v84_v12 = vrot.slane %v1811_v1, 2 }
   0x4   :  { %v52_v10 = vsel %vm49_vm0, %v50_v3, %v51_v4  ;;  %v54_v11 = vsel %vm49_vm0, %v51_v4, %v53_v5  ;;  %v86_v13 = vrot.slane %v1816_v2, 2 }
   0x5   :  { %v1666_v14 = vpack.i.bf16 %v54_v11, %v52_v10  ;;  %v118_v15 = vsel %vm115_vm1, %v116_v6, %v117_v7  ;;  %v120_v16 = vsel %vm115_vm1, %v117_v7, %v119_v8 }
   0x6   :  { %v1676_v17 = vpack.i.bf16 %v120_v16, %v118_v15 }
   0x7   :  { %14 = vsyncpa [#allocation3], 0  ;;  %s1733_s15 = smov 28   ;;  %s1734_s16 = smov 84   ;;  %v85_v18 = vsel %vm82_vm2, %v83_v9, %v84_v12  ;;  %v87_v19 = vsel %vm82_vm2, %v84_v12, %v86_v13  ;;  %v1838_v20 = vld [vmem:[%s3012_s0 + $0x18] sm:$0xf] }
   0x8   :  { %1667 = vrot.lane.b32.xlu0 %v1666_v14, %s1733_s15  ;;  %1677 = vrot.lane.b32.xlu1 %v1676_v17, %s1734_s16  ;;  %v1843_v21 = vld [vmem:[%s3012_s0 + $0x20] sm:$0xff]  ;;  %v1848_v22 = vld [vmem:[%s3012_s0 + $0x28] sm:$0xff]  ;;  %v149_v23 = vrot.slane %v1806_v0, 4  ;;  %v150_v24 = vrot.slane %v1811_v1, 4  ;;  %vm148_vm3 = vcmask 1043456   ;;  %v152_v25 = vrot.slane %v1816_v2, 4 }
   0x9   :  { %v1671_v26 = vpack.i.bf16 %v87_v19, %v85_v18  ;;  %v88_v27 = vrot.slane %v1838_v20, 2  ;;  %v90_v28 = vrot.slane %v1843_v21, 2  ;;  %v91_v29 = vrot.slane %v1848_v22, 2  ;;  %s1735_s23 = smov 112   ;;  %s1736_s24 = smov 56   ;;  %v239_v42 = vld [vmem:[%s3013_s1 + $0xf0] sm:$0xff] }
   0xa   :  { %v121_v30 = vrot.slane %v1838_v20, 3  ;;  %v123_v31 = vrot.slane %v1843_v21, 3  ;;  %v124_v32 = vrot.slane %v1848_v22, 3  ;;  %v153_v33 = vsel %vm148_vm3, %v150_v24, %v152_v25  ;;  %v240_v43 = vld [vmem:[%s3013_s1 + $0xf8] sm:$0xff]  ;;  %v237_v44 = vld [vmem:[%s3013_s1 + $0xe0] sm:$0xff]  ;;  %270 = vmatpush.msra.mxu0 %v239_v42  ;;  %v238_v48 = vld [vmem:[%s3013_s1 + $0xe8] sm:$0xff] }
   0xb   :  { %v151_v34 = vsel %vm148_vm3, %v149_v23, %v150_v24  ;;  %165 = vrot.lane.b32.xlu2 %v153_v33, %s1735_s23  ;;  %v58_v35 = vrot.slane %v1848_v22, 1  ;;  %v55_v36 = vrot.slane %v1838_v20, 1  ;;  %v57_v37 = vrot.slane %v1843_v21, 1  ;;  %340 = vmatpush.msra.mxu2 %v240_v43  ;;  %v1892_v49 = vld [vmem:[%s3012_s0 + $0x30] sm:$0xff]  ;;  %v1897_v50 = vld [vmem:[%s3012_s0 + $0x38] sm:$0xf] }
   0xc   :  { %v89_v40 = vsel %vm82_vm2, %v86_v13, %v88_v27  ;;  %v92_v41 = vsel %vm82_vm2, %v90_v28, %v91_v29  ;;  %v122_v45 = vsel %vm115_vm1, %v119_v8, %v121_v30  ;;  %v125_v46 = vsel %vm115_vm1, %v123_v31, %v124_v32  ;;  %v235_v51 = vld [vmem:[%s3013_s1 + $0xd0] sm:$0xff]  ;;  %271 = vmatpush.msra.mxu0 %v237_v44  ;;  %v236_v53 = vld [vmem:[%s3013_s1 + $0xd8] sm:$0xff]  ;;  %v233_v55 = vld [vmem:[%s3013_s1 + $0xc0] sm:$0xff]  ;;  %s1738_s26 = smov 98   ;;  %s1739_s27 = smov 108  }
   0xd   :  { %v56_v38 = vsel %vm49_vm0, %v53_v5, %v55_v36  ;;  %v59_v39 = vsel %vm49_vm0, %v57_v37, %v58_v35  ;;  %v1686_v52 = vpack.i.bf16 %v92_v41, %v89_v40  ;;  %341 = vmatpush.msra.mxu2 %v238_v48  ;;  %v1691_v54 = vpack.i.bf16 %v125_v46, %v122_v45  ;;  %v234_v58 = vld [vmem:[%s3013_s1 + $0xc8] sm:$0xff]  ;;  %v231_v60 = vld [vmem:[%s3013_s1 + $0xb0] sm:$0xff]  ;;  %v232_v61 = vld [vmem:[%s3013_s1 + $0xb8] sm:$0xff]  ;;  %s1740_s28 = smov 78   ;;  %s1741_s29 = smov 88  }
   0xe   :  { %v1681_v47 = vpack.i.bf16 %v59_v39, %v56_v38  ;;  %v60_v56 = vrot.slane %v1892_v49, 1  ;;  %v62_v57 = vrot.slane %v1897_v50, 1  ;;  %272 = vmatpush.msra.mxu0 %v235_v51  ;;  %v154_v59 = vrot.slane %v1838_v20, 4  ;;  %v229_v3 = vld [vmem:[%s3013_s1 + $0xa0] sm:$0xff]  ;;  %v230_v6 = vld [vmem:[%s3013_s1 + $0xa8] sm:$0xff]  ;;  %v227_v8 = vld [vmem:[%s3013_s1 + $0x90] sm:$0xff] }
   0xf   :  { %342 = vmatpush.msra.mxu2 %v236_v53  ;;  %v156_v62 = vrot.slane %v1843_v21, 4  ;;  %v157_v63 = vrot.slane %v1848_v22, 4  ;;  %v228_v9 = vld [vmem:[%s3013_s1 + $0x98] sm:$0xff]  ;;  %v225_v12 = vld [vmem:[%s3013_s1 + $0x80] sm:$0xff]  ;;  %v226_v13 = vld [vmem:[%s3013_s1 + $0x88] sm:$0xff]  ;;  %v93_v14 = vrot.slane %v1892_v49, 2 }
  0x10   :  { %1672 = vrot.lane.b32.xlu0 %v1671_v26, %s1736_s24  ;;  %163 = vrot.lane.b32.xlu1 %v151_v34, %s1735_s23  ;;  %v61_v4 = vsel %vm49_vm0, %v58_v35, %v60_v56  ;;  %v63_v5 = vsel %vm49_vm0, %v60_v56, %v62_v57  ;;  %v155_v7 = vsel %vm148_vm3, %v152_v25, %v154_v59  ;;  %v223_v15 = vld [vmem:[%s3013_s1 + $0x70] sm:$0xff]  ;;  %v224_v16 = vld [vmem:[%s3013_s1 + $0x78] sm:$0xff]  ;;  %v126_v17 = vrot.slane %v1892_v49, 3  ;;  %s1742_s30 = smov 68   ;;  %s1743_s10 = smov 58  }
  0x11   :  { %273 = vmatpush.msra.mxu0 %v233_v55  ;;  %343 = vmatpush.msra.mxu2 %v234_v58  ;;  %v158_v10 = vsel %vm148_vm3, %v156_v62, %v157_v63  ;;  %v1696_v11 = vpack.i.bf16 %v63_v5, %v61_v4  ;;  %v159_v18 = vrot.slane %v1892_v49, 4  ;;  %v94_v19 = vsel %vm82_vm2, %v91_v29, %v93_v14  ;;  %v221_v30 = vld [vmem:[%s3013_s1 + $0x60] sm:$0xff]  ;;  %v222_v31 = vld [vmem:[%s3013_s1 + $0x68] sm:$0xff]  ;;  %v220_v33 = vld [vmem:[%s3013_s1 + $0x58] sm:$0xff]  ;;  %s1744_s11 = smov 48   ;;  %s1745_s12 = smov 38  }
  0x12   :  { %v127_v20 = vsel %vm115_vm1, %v124_v32, %v126_v17  ;;  %v95_v24 = vrot.slane %v1897_v50, 2  ;;  %v128_v25 = vrot.slane %v1897_v50, 3  ;;  %v161_v26 = vrot.slane %v1897_v50, 4  ;;  %v219_v32 = vld [vmem:[%s3013_s1 + $0x50] sm:$0xff]  ;;  %v217_v34 = vld [vmem:[%s3013_s1 + $0x40] sm:$0xff]  ;;  %v218_v35 = vld [vmem:[%s3013_s1 + $0x48] sm:$0xff] }
  0x13   :  { %1682 = vrot.lane.b32.xlu2 %v1681_v47, %s1733_s15  ;;  %274 = vmatpush.msra.mxu0 %v231_v60  ;;  %v160_v23 = vsel %vm148_vm3, %v157_v63, %v159_v18  ;;  %v215_v36 = vld [vmem:[%s3013_s1 + $0x30] sm:$0xff]  ;;  %v216_v37 = vld [vmem:[%s3013_s1 + $0x38] sm:$0xff]  ;;  %v213_v38 = vld [vmem:[%s3013_s1 + $0x20] sm:$0xff]  ;;  %vm181_vm4 = vcmask 228352   ;;  %vm251_vm5 = vcmask 97280   ;;  %vm188_vm6 = vcmask 457728  }
  0x14   :  { %344 = vmatpush.msra.mxu2 %v232_v61  ;;  %v96_v27 = vsel %vm82_vm2, %v93_v14, %v95_v24  ;;  %v129_v28 = vsel %vm115_vm1, %v126_v17, %v128_v25  ;;  %v162_v29 = vsel %vm148_vm3, %v159_v18, %v161_v26  ;;  %v243_v39 = vld [vmem:[%s3013_s1 + $0x110] sm:$0xf]  ;;  %v214_v40 = vld [vmem:[%s3013_s1 + $0x28] sm:$0xff]  ;;  %v244_v41 = vld [vmem:[%s3013_s1 + $0x118] sm:$0xf]  ;;  %vm195_vm7 = vcmask 687104  }
  0x15   :  { %275 = vmatpush.msra.mxu0 %v229_v3  ;;  %1625 = vmatpush.msk.msra.mxu1 %vm148_vm3, %v243_v39  ;;  %v211_v42 = vld [vmem:[%s3013_s1 + $0x10] sm:$0xff]  ;;  %v241_v43 = vld [vmem:[%s3013_s1 + $0x100] sm:$0xff]  ;;  %v212_v44 = vld [vmem:[%s3013_s1 + $0x18] sm:$0xff]  ;;  %vm3025_vm8 = vcmask 916480   ;;  %vm3024_vm9 = vcmask 1040384   ;;  %vm3023_vm10 = vcmask 1041408  }
  0x16   :  { %345 = vmatpush.msra.mxu2 %v230_v6  ;;  %1632 = vmatpush.msk.msra.mxu3 %vm148_vm3, %v244_v41  ;;  %v242_v45 = vld [vmem:[%s3013_s1 + $0x108] sm:$0xff]  ;;  %v209_v46 = vld [vmem:[%s3013_s1] sm:$0xff]  ;;  %vm3022_vm11 = vcmask 1042432   ;;  %s1746_s13 = smov 18   ;;  %vm794_vm12 = vcmask 80896   ;;  %vm799_vm13 = vcmask 162816  }
  0x17   :  { %276 = vmatpush.msra.mxu0 %v227_v8  ;;  %320 = vmatpush.msra.mxu1 %v241_v43  ;;  %v210_v47 = vld [vmem:[%s3013_s1 + $0x8] sm:$0xff]  ;;  %vm804_vm14 = vcmask 244736   ;;  %vm809_vm15 = vcmask 326656   ;;  %s1748_s14 = smov 104   ;;  %s1751_s0 = smov 32  }
  0x18   :  { %1687 = vrot.lane.b32.xlu0 %v1686_v52, %s1736_s24  ;;  %1692 = vrot.lane.b32.xlu1 %v1691_v54, %s1734_s16  ;;  %s1616_s22 = sshll.u32 %s3021_s9, 4  ;;  %s1617_s22 = int_to_ptr.hbm [resolvable:$true] %s1616_s22 }
  0x19   :  { %346 = vmatpush.msra.mxu2 %v228_v9  ;;  %277 = vmatpush.msra.mxu0 %v225_v12 }
  0x1a   :  { %390 = vmatpush.msra.mxu3 %v242_v45 }
  0x1b   :  { %167 = vrot.lane.b32.xlu2 %v155_v7, %s1735_s23  ;;  %347 = vmatpush.msra.mxu2 %v226_v13 }
  0x1c   :  { %278 = vmatpush.msra.mxu0 %v223_v15 }
  0x1d   :  { %348 = vmatpush.msra.mxu2 %v224_v16 }
  0x1e   :  { %279 = vmatpush.msra.mxu0 %v221_v30 }
  0x1f   :  { %349 = vmatpush.msra.mxu2 %v222_v31 }
  0x20   :  { %169 = vrot.lane.b32.xlu0 %v158_v10, %s1735_s23  ;;  %1697 = vrot.lane.b32.xlu1 %v1696_v11, %s1733_s15 }
  0x21   :  { %280 = vmatpush.msra.mxu0 %v219_v32  ;;  %350 = vmatpush.msra.mxu2 %v220_v33 }
  0x23   :  { %105 = vrot.lane.b32.xlu2 %v94_v19, %s1736_s24  ;;  %281 = vmatpush.msra.mxu0 %v217_v34 }
  0x24   :  { %351 = vmatpush.msra.mxu2 %v218_v35 }
  0x25   :  { %282 = vmatpush.msra.mxu0 %v215_v36 }
  0x26   :  { %352 = vmatpush.msra.mxu2 %v216_v37 }
  0x27   :  { %283 = vmatpush.msra.mxu0 %v213_v38 }
  0x28   :  { %138 = vrot.lane.b32.xlu0 %v127_v20, %s1734_s16  ;;  %171 = vrot.lane.b32.xlu1 %v160_v23, %s1735_s23 }
  0x29   :  { %353 = vmatpush.msra.mxu2 %v214_v40  ;;  %284 = vmatpush.msra.mxu0 %v211_v42 }
  0x2b   :  { %107 = vrot.lane.b32.xlu2 %v96_v27, %s1736_s24  ;;  %354 = vmatpush.msra.mxu2 %v212_v44 }
  0x2c   :  { %285 = vmatpush.msra.mxu0 %v209_v46 }
  0x2d   :  { %355 = vmatpush.msra.mxu2 %v210_v47 }
  0x30   :  { %140 = vrot.lane.b32.xlu0 %v129_v28, %s1734_s16  ;;  %173 = vrot.lane.b32.xlu1 %v162_v29, %s1735_s23 }
  0x65   :  { %v166_v51 = vpop.permute.xlu2 %165 }
  0x6d   :  { %v1683_v63 = vpop.permute.xlu2 %1682 }
  0x6e   :  { %v1685_v13 = vunpack.i.h.bf16 %v1683_v63 }
  0x70   :  { %v185_v18 = vsel %vm181_vm4, %v1843_v21, %v1685_v13 }
  0x75   :  { %v168_v14 = vpop.permute.xlu2 %167 }
  0x7a   :  { %v1668_v48 = vpop.permute.xlu0 %1667  ;;  %v1678_v50 = vpop.permute.xlu1 %1677 }
  0x7b   :  { %v1669_v52 = vunpack.i.l.bf16 %v1668_v48  ;;  %v1670_v56 = vunpack.i.h.bf16 %v1668_v48  ;;  %v1679_v58 = vunpack.i.l.bf16 %v1678_v50  ;;  %v1680_v5 = vunpack.i.h.bf16 %v1678_v50 }
  0x7d   :  { %v182_v57 = vsel %vm181_vm4, %v1806_v0, %v1669_v52  ;;  %v183_v3 = vsel %vm181_vm4, %v1811_v1, %v1670_v56  ;;  %v1684_v0 = vunpack.i.l.bf16 %v1683_v63  ;;  %v106_v25 = vpop.permute.xlu2 %105 }
  0x7f   :  { %v184_v9 = vsel %vm181_vm4, %v1816_v2, %v1684_v0 }
  0x82   :  { %v1673_v53 = vpop.permute.xlu0 %1672  ;;  %v164_v55 = vpop.permute.xlu1 %163 }
  0x83   :  { %v1674_v54 = vunpack.i.l.bf16 %v1673_v53  ;;  %1626 = vmatmul.msk.f32.vlgmr.msra.gmra.mxu1 %vm251_vm5, %v164_v55  ;;  %1633 = vmatmul.msk.f32.vlgmr.msra.gmra.mxu3 %vm251_vm5, %v164_v55  ;;  %v1675_v59 = vunpack.i.h.bf16 %v1673_v53 }
  0x85   :  { %v189_v60 = vsel %vm188_vm6, %v182_v57, %v1674_v54  ;;  %v190_v4 = vsel %vm188_vm6, %v183_v3, %v1675_v59  ;;  %v108_v33 = vpop.permute.xlu2 %107 }
  0x86   :  { %v196_v61 = vsel %vm195_vm7, %v189_v60, %v1679_v58  ;;  %v197_v10 = vsel %vm195_vm7, %v190_v4, %v1680_v5 }
  0x87   :  { %v203_v62 = vsel %vm3025_vm8, %v196_v61, %v164_v55  ;;  %v204_v1 = vsel %vm3025_vm8, %v197_v10, %v166_v51 }
  0x88   :  { %286 = vmatmul.f32.vlgmr.msra.gmra.mxu0 %v203_v62  ;;  %356 = vmatmul.f32.vlgmr.msra.gmra.mxu2 %v203_v62 }
  0x8a   :  { %v1688_v6 = vpop.permute.xlu0 %1687  ;;  %v1693_v8 = vpop.permute.xlu1 %1692 }
  0x8b   :  { %v1689_v7 = vunpack.i.l.bf16 %v1688_v6  ;;  %1627 = vmatmul.msk.f32.gmra.mxu1 %vm251_vm5, %v166_v51  ;;  %1634 = vmatmul.msk.f32.gmra.mxu3 %vm251_vm5, %v166_v51  ;;  %v1694_v11 = vunpack.i.l.bf16 %v1693_v8  ;;  %v1690_v2 = vunpack.i.h.bf16 %v1688_v6  ;;  %v1695_v20 = vunpack.i.h.bf16 %v1693_v8 }
  0x8d   :  { %v191_v12 = vsel %vm188_vm6, %v184_v9, %v1689_v7  ;;  %v192_v24 = vsel %vm188_vm6, %v185_v18, %v1690_v2 }
  0x8e   :  { %v198_v15 = vsel %vm195_vm7, %v191_v12, %v1694_v11  ;;  %v199_v26 = vsel %vm195_vm7, %v192_v24, %v1695_v20 }
  0x8f   :  { %v205_v16 = vsel %vm3025_vm8, %v198_v15, %v168_v14 }
  0x90   :  { %289 = vmatmul.f32.gmra.mxu0 %v204_v1  ;;  %359 = vmatmul.f32.gmra.mxu2 %v204_v1 }
  0x92   :  { %v170_v17 = vpop.permute.xlu0 %169  ;;  %v1698_v19 = vpop.permute.xlu1 %1697 }
  0x93   :  { %1628 = vmatmul.msk.f32.gmra.mxu1 %vm251_vm5, %v168_v14  ;;  %1635 = vmatmul.msk.f32.gmra.mxu3 %vm251_vm5, %v168_v14  ;;  %v1699_v23 = vunpack.i.l.bf16 %v1698_v19  ;;  %v206_v21 = vsel %vm3025_vm8, %v199_v26, %v170_v17  ;;  %v1700_v30 = vunpack.i.h.bf16 %v1698_v19 }
  0x95   :  { %v186_v27 = vsel %vm181_vm4, %v1848_v22, %v1699_v23  ;;  %v187_v34 = vsel %vm181_vm4, %v1892_v49, %v1700_v30  ;;  %v245_v49 = vld [vmem:[%s3014_s2] sm:$0x3]  ;;  %s1737_s2 = smov 118   ;;  %vm725_vm4 = vcmask 556032  }
  0x96   :  { %v193_v29 = vsel %vm188_vm6, %v186_v27, %v106_v25  ;;  %v194_v35 = vsel %vm188_vm6, %v187_v34, %v108_v33  ;;  %v2079_v41 = vperm.slane %v245_v49, 0  ;;  %v2082_v46 = vperm.slane %v245_v49, 1 }
  0x97   :  { %vm819_vm6 = vcmask 490496  }
  0x98   :  { %292 = vmatmul.f32.gmra.mxu0 %v205_v16  ;;  %362 = vmatmul.f32.gmra.mxu2 %v205_v16 }
  0x9a   :  { %v139_v28 = vpop.permute.xlu0 %138  ;;  %v172_v31 = vpop.permute.xlu1 %171 }
  0x9b   :  { %1629 = vmatmul.msk.f32.gmra.mxu1 %vm251_vm5, %v170_v17  ;;  %1636 = vmatmul.msk.f32.gmra.mxu3 %vm251_vm5, %v170_v17  ;;  %v200_v32 = vsel %vm195_vm7, %v193_v29, %v139_v28 }
  0x9c   :  { %v207_v22 = vsel %vm3025_vm8, %v200_v32, %v172_v31 }
  0xa0   :  { %295 = vmatmul.f32.gmra.mxu0 %v206_v21  ;;  %365 = vmatmul.f32.gmra.mxu2 %v206_v21 }
  0xa2   :  { %v141_v36 = vpop.permute.xlu0 %140  ;;  %v174_v38 = vpop.permute.xlu1 %173 }
  0xa3   :  { %1630 = vmatmul.msk.f32.gmra.mxu1 %vm251_vm5, %v172_v31  ;;  %1637 = vmatmul.msk.f32.gmra.mxu3 %vm251_vm5, %v172_v31  ;;  %v201_v37 = vsel %vm195_vm7, %v194_v35, %v141_v36  ;;  %vm824_vm7 = vcmask 572416  }
  0xa4   :  { %v208_v39 = vsel %vm3025_vm8, %v201_v37, %v174_v38  ;;  %vm844_vm8 = vcmask 900096  }
  0xa8   :  { %298 = vmatmul.f32.gmra.mxu0 %v207_v22  ;;  %368 = vmatmul.f32.gmra.mxu2 %v207_v22 }
  0xab   :  { %1631 = vmatmul.msk.f32.gmra.mxu1 %vm251_vm5, %v174_v38  ;;  %1638 = vmatmul.msk.f32.gmra.mxu3 %vm251_vm5, %v174_v38  ;;  %vm814_vm5 = vcmask 408576  }
  0xb0   :  { %301 = vmatmul.f32.gmra.mxu0 %v208_v39  ;;  %371 = vmatmul.f32.gmra.mxu2 %v208_v39 }
 0x100   :  { %v322_v40 = vpop.f32.mrf.mxu1 }
 0x105   :  { %v287_v42 = vpop.f32.mrf.mxu0 }
 0x106   :  { %v288_v43 = vadd.f32 %v287_v42, %v2079_v41  ;;  %v392_v44 = vpop.f32.mrf.mxu3 }
 0x108   :  { %v323_v45 = vadd.f32 %v322_v40, %v288_v43  ;;  %v325_v47 = vpop.f32.mrf.mxu1 }
 0x10a   :  { %v414_v48 = vrot.slane %v323_v45, 1 }
 0x10b   :  { %v357_v50 = vpop.f32.mrf.mxu2 }
 0x10c   :  { %v422_v51 = vmax.f32 %v323_v45, %v414_v48  ;;  %v358_v52 = vadd.f32 %v357_v50, %v2082_v46 }
 0x10d   :  { %v290_v53 = vpop.f32.mrf.mxu0 }
 0x10e   :  { %v462_v54 = vrot.slane %v422_v51, 1  ;;  %v393_v55 = vadd.f32 %v392_v44, %v358_v52  ;;  %v291_v56 = vadd.f32 %v290_v53, %v2079_v41  ;;  %v395_v57 = vpop.f32.mrf.mxu3  ;;  %v470_v59 = vrot.slane %v422_v51, 2 }
 0x10f   :  { %v478_v9 = vrot.slane %v422_v51, 3 }
 0x110   :  { %v415_v58 = vrot.slane %v393_v55, 1  ;;  %v326_v60 = vadd.f32 %v325_v47, %v291_v56  ;;  %v328_v61 = vpop.f32.mrf.mxu1  ;;  %v551_v62 = vsel %vm3024_vm9, %v422_v51, %v462_v54 }
 0x111   :  { %v556_v8 = vsel %vm3023_vm10, %v551_v62, %v470_v59 }
 0x112   :  { %v423_v63 = vmax.f32 %v393_v55, %v415_v58  ;;  %v430_v3 = vrot.slane %v326_v60, 1  ;;  %v561_v17 = vsel %vm3022_vm11, %v556_v8, %v478_v9 }
 0x113   :  { %v360_v0 = vpop.f32.mrf.mxu2 }
 0x114   :  { %v463_v4 = vrot.slane %v423_v63, 1  ;;  %v361_v5 = vadd.f32 %v360_v0, %v2082_v46  ;;  %v438_v6 = vmax.f32 %v326_v60, %v430_v3  ;;  %v471_v10 = vrot.slane %v423_v63, 2 }
 0x115   :  { %v293_v7 = vpop.f32.mrf.mxu0  ;;  %v479_v28 = vrot.slane %v423_v63, 3 }
 0x116   :  { %v396_v11 = vadd.f32 %v395_v57, %v361_v5  ;;  %v294_v1 = vadd.f32 %v293_v7, %v2079_v41  ;;  %v552_v12 = vsel %vm3024_vm9, %v423_v63, %v463_v4  ;;  %v490_v13 = vrot.slane %v438_v6, 4  ;;  %v398_v15 = vpop.f32.mrf.mxu3 }
 0x117   :  { %v498_v14 = vrot.slane %v438_v6, 5  ;;  %v506_v18 = vrot.slane %v438_v6, 6  ;;  %v514_v19 = vrot.slane %v438_v6, 7  ;;  %v557_v27 = vsel %vm3023_vm10, %v552_v12, %v471_v10 }
 0x118   :  { %v431_v2 = vrot.slane %v396_v11, 1  ;;  %v329_v16 = vadd.f32 %v328_v61, %v294_v1  ;;  %v565_v20 = vsel %vm148_vm3, %v561_v17, %v490_v13  ;;  %v331_v23 = vpop.f32.mrf.mxu1  ;;  %v562_v36 = vsel %vm3022_vm11, %v557_v27, %v479_v28 }
 0x119   :  { %v569_v26 = vsel %vm115_vm1, %v565_v20, %v498_v14 }
 0x11a   :  { %v439_v24 = vmax.f32 %v396_v11, %v431_v2  ;;  %v446_v25 = vrot.slane %v329_v16, 1  ;;  %v573_v29 = vsel %vm82_vm2, %v569_v26, %v506_v18 }
 0x11b   :  { %v363_v21 = vpop.f32.mrf.mxu2  ;;  %v2098_v33 = vsel %vm49_vm0, %v573_v29, %v514_v19 }
 0x11c   :  { %v491_v30 = vrot.slane %v439_v24, 4  ;;  %v454_v31 = vmax.f32 %v329_v16, %v446_v25  ;;  %v364_v32 = vadd.f32 %v363_v21, %v2082_v46  ;;  %597 = vrot.lane.b32.xlu2 %v2098_v33, %s1737_s2  ;;  %v499_v22 = vrot.slane %v439_v24, 5 }
 0x11d   :  { %v296_v34 = vpop.f32.mrf.mxu0  ;;  %v507_v35 = vrot.slane %v439_v24, 6  ;;  %v515_v40 = vrot.slane %v439_v24, 7 }
 0x11e   :  { %v526_v37 = vrot.slane %v454_v31, 1  ;;  %v297_v38 = vadd.f32 %v296_v34, %v2079_v41  ;;  %v399_v39 = vadd.f32 %v398_v15, %v364_v32  ;;  %v566_v49 = vsel %vm148_vm3, %v562_v36, %v491_v30  ;;  %v401_v45 = vpop.f32.mrf.mxu3 }
 0x11f   :  { %v570_v42 = vsel %vm115_vm1, %v566_v49, %v499_v22  ;;  %v534_v43 = vrot.slane %v454_v31, 2  ;;  %v542_v44 = vrot.slane %v454_v31, 3 }
 0x120   :  { %v447_v47 = vrot.slane %v399_v39, 1  ;;  %v332_v48 = vadd.f32 %v331_v23, %v297_v38  ;;  %v574_v50 = vsel %vm82_vm2, %v570_v42, %v507_v35  ;;  %v581_v51 = vsel %vm3024_vm9, %v454_v31, %v526_v37  ;;  %v334_v58 = vpop.f32.mrf.mxu1 }
 0x121   :  { %v2109_v52 = vsel %vm49_vm0, %v574_v50, %v515_v40  ;;  %v585_v53 = vsel %vm3023_vm10, %v581_v51, %v534_v43 }
 0x122   :  { %v455_v54 = vmax.f32 %v399_v39, %v447_v47  ;;  %v416_v55 = vrot.slane %v332_v48, 1  ;;  %617 = vrot.lane.b32.xlu1 %v2109_v52, %s1737_s2  ;;  %v2115_v56 = vsel %vm3022_vm11, %v585_v53, %v542_v44 }
 0x123   :  { %v366_v57 = vpop.f32.mrf.mxu2  ;;  %599 = vrot.lane.b32.xlu0 %v2115_v56, %s1737_s2 }
 0x124   :  { %v527_v59 = vrot.slane %v455_v54, 1  ;;  %v424_v60 = vmax.f32 %v332_v48, %v416_v55  ;;  %v367_v61 = vadd.f32 %v366_v57, %v2082_v46  ;;  %v535_v62 = vrot.slane %v455_v54, 2 }
 0x125   :  { %v299_v63 = vpop.f32.mrf.mxu0  ;;  %v543_v3 = vrot.slane %v455_v54, 3 }
 0x126   :  { %v464_v0 = vrot.slane %v424_v60, 1  ;;  %v300_v4 = vadd.f32 %v299_v63, %v2079_v41  ;;  %v402_v5 = vadd.f32 %v401_v45, %v367_v61  ;;  %v582_v6 = vsel %vm3024_vm9, %v455_v54, %v527_v59  ;;  %v404_v12 = vpop.f32.mrf.mxu3 }
 0x127   :  { %v472_v7 = vrot.slane %v424_v60, 2  ;;  %v586_v9 = vsel %vm3023_vm10, %v582_v6, %v535_v62  ;;  %v480_v18 = vrot.slane %v424_v60, 3 }
 0x128   :  { %v335_v8 = vadd.f32 %v334_v58, %v300_v4  ;;  %v553_v10 = vsel %vm3024_vm9, %v424_v60, %v464_v0  ;;  %v417_v11 = vrot.slane %v402_v5, 1  ;;  %v2125_v1 = vsel %vm3022_vm11, %v586_v9, %v543_v3  ;;  %v337_v24 = vpop.f32.mrf.mxu1 }
 0x129   :  { %619 = vrot.lane.b32.xlu2 %v2125_v1, %s1737_s2  ;;  %v558_v2 = vsel %vm3023_vm10, %v553_v10, %v472_v7 }
 0x12a   :  { %v432_v13 = vrot.slane %v335_v8, 1  ;;  %v425_v14 = vmax.f32 %v402_v5, %v417_v11  ;;  %v563_v31 = vsel %vm3022_vm11, %v558_v2, %v480_v18 }
 0x12b   :  { %v369_v15 = vpop.f32.mrf.mxu2 }
 0x12c   :  { %v440_v16 = vmax.f32 %v335_v8, %v432_v13  ;;  %v370_v17 = vadd.f32 %v369_v15, %v2082_v46  ;;  %v465_v19 = vrot.slane %v425_v14, 1  ;;  %v473_v20 = vrot.slane %v425_v14, 2 }
 0x12d   :  { %v302_v23 = vpop.f32.mrf.mxu0 }
 0x12e   :  { %v492_v25 = vrot.slane %v440_v16, 4  ;;  %v500_v26 = vrot.slane %v440_v16, 5  ;;  %v303_v27 = vadd.f32 %v302_v23, %v2079_v41  ;;  %v405_v28 = vadd.f32 %v404_v12, %v370_v17  ;;  %v407_v42 = vpop.f32.mrf.mxu3 }
 0x12f   :  { %v554_v21 = vsel %vm3024_vm9, %v425_v14, %v465_v19  ;;  %v508_v29 = vrot.slane %v440_v16, 6  ;;  %v516_v30 = vrot.slane %v440_v16, 7  ;;  %v481_v41 = vrot.slane %v425_v14, 3 }
 0x130   :  { %v433_v32 = vrot.slane %v405_v28, 1  ;;  %v338_v34 = vadd.f32 %v337_v24, %v303_v27  ;;  %v567_v22 = vsel %vm148_vm3, %v563_v31, %v492_v25  ;;  %v559_v36 = vsel %vm3023_vm10, %v554_v21, %v473_v20 }
 0x131   :  { %v571_v35 = vsel %vm115_vm1, %v567_v22, %v500_v26  ;;  %v564_v51 = vsel %vm3022_vm11, %v559_v36, %v481_v41 }
 0x132   :  { %v441_v37 = vmax.f32 %v405_v28, %v433_v32  ;;  %v448_v38 = vrot.slane %v338_v34, 1  ;;  %v575_v39 = vsel %vm82_vm2, %v571_v35, %v508_v29 }
 0x133   :  { %v372_v49 = vpop.f32.mrf.mxu2  ;;  %v2139_v40 = vsel %vm49_vm0, %v575_v39, %v516_v30 }
 0x134   :  { %v493_v43 = vrot.slane %v441_v37, 4  ;;  %v501_v44 = vrot.slane %v441_v37, 5  ;;  %v456_v45 = vmax.f32 %v338_v34, %v448_v38  ;;  %v373_v47 = vadd.f32 %v372_v49, %v2082_v46  ;;  %601 = vrot.lane.b32.xlu0 %v2139_v40, %s1737_s2 }
 0x135   :  { %v509_v48 = vrot.slane %v441_v37, 6  ;;  %v517_v50 = vrot.slane %v441_v37, 7 }
 0x136   :  { %v528_v53 = vrot.slane %v456_v45, 1  ;;  %v408_v54 = vadd.f32 %v407_v42, %v373_v47  ;;  %v568_v55 = vsel %vm148_vm3, %v564_v51, %v493_v43  ;;  %v536_v57 = vrot.slane %v456_v45, 2 }
 0x137   :  { %v572_v58 = vsel %vm115_vm1, %v568_v55, %v501_v44  ;;  %v544_v59 = vrot.slane %v456_v45, 3 }
 0x138   :  { %v449_v60 = vrot.slane %v408_v54, 1  ;;  %v576_v61 = vsel %vm82_vm2, %v572_v58, %v509_v48  ;;  %v583_v46 = vsel %vm3024_vm9, %v456_v45, %v528_v53 }
 0x139   :  { %v2150_v62 = vsel %vm49_vm0, %v576_v61, %v517_v50  ;;  %v587_v63 = vsel %vm3023_vm10, %v583_v46, %v536_v57 }
 0x13a   :  { %v457_v3 = vmax.f32 %v408_v54, %v449_v60  ;;  %621 = vrot.lane.b32.xlu2 %v2150_v62, %s1737_s2  ;;  %v2156_v0 = vsel %vm3022_vm11, %v587_v63, %v544_v59 }
 0x13b   :  { %603 = vrot.lane.b32.xlu1 %v2156_v0, %s1737_s2 }
 0x13c   :  { %v529_v4 = vrot.slane %v457_v3, 1  ;;  %v537_v5 = vrot.slane %v457_v3, 2  ;;  %v545_v6 = vrot.slane %v457_v3, 3 }
 0x13e   :  { %v584_v7 = vsel %vm3024_vm9, %v457_v3, %v529_v4  ;;  %vm839_vm9 = vcmask 818176  }
 0x13f   :  { %v588_v8 = vsel %vm3023_vm10, %v584_v7, %v537_v5  ;;  %vm834_vm10 = vcmask 736256  }
 0x140   :  { %v2163_v9 = vsel %vm3022_vm11, %v588_v8, %v545_v6  ;;  %vm829_vm11 = vcmask 654336  }
 0x141   :  { %623 = vrot.lane.b32.xlu0 %v2163_v9, %s1737_s2 }
 0x176   :  { %v598_v10 = vpop.permute.xlu2 %597 }
 0x177   :  { %v2168_v11 = vmax.f32 %v2098_v33, %v598_v10 }
 0x179   :  { %665 = vrot.lane.b32.xlu2 %v2168_v11, %s1738_s26  ;;  %653 = vrot.lane.b32.xlu0 %v2168_v11, %s1739_s27 }
 0x17a   :  { %641 = vrot.lane.b32.xlu1 %v2168_v11, %s1737_s2 }
 0x181   :  { %689 = vrot.lane.b32.xlu0 %v2168_v11, %s1740_s28 }
 0x182   :  { %677 = vrot.lane.b32.xlu1 %v2168_v11, %s1741_s29 }
 0x194   :  { %v618_v12 = vpop.permute.xlu1 %617 }
 0x195   :  { %v629_v13 = vmax.f32 %v2098_v33, %v618_v12  ;;  %v630_v14 = vmax.f32 %v2109_v52, %v618_v12  ;;  %v600_v15 = vpop.permute.xlu0 %599  ;;  %v620_v33 = vpop.permute.xlu2 %619 }
 0x196   :  { %v2186_v2 = vmax.f32 %v2115_v56, %v600_v15  ;;  %v631_v52 = vmax.f32 %v2115_v56, %v620_v33  ;;  %v632_v16 = vmax.f32 %v2125_v1, %v620_v33 }
 0x197   :  { %711 = vrot.lane.b32.xlu0 %v630_v14, %s1742_s30  ;;  %770 = vrot.lane.b32.xlu1 %v630_v14, %s1733_s15 }
 0x198   :  { %709 = vrot.lane.b32.xlu2 %v629_v13, %s1742_s30 }
 0x19d   :  { %v622_v1 = vpop.permute.xlu2 %621 }
 0x19e   :  { %v634_v18 = vmax.f32 %v2150_v62, %v622_v1  ;;  %v633_v19 = vmax.f32 %v2139_v40, %v622_v1 }
 0x19f   :  { %734 = vrot.lane.b32.xlu0 %v630_v14, %s1743_s10  ;;  %655 = vrot.lane.b32.xlu1 %v2186_v2, %s1739_s27 }
 0x1a0   :  { %746 = vrot.lane.b32.xlu2 %v630_v14, %s1744_s11 }
 0x1a6   :  { %v602_v56 = vpop.permute.xlu0 %601 }
 0x1a7   :  { %758 = vrot.lane.b32.xlu0 %v630_v14, %s1745_s12  ;;  %691 = vrot.lane.b32.xlu1 %v2186_v2, %s1740_s28  ;;  %v2211_v17 = vmax.f32 %v2139_v40, %v602_v56 }
 0x1a8   :  { %782 = vrot.lane.b32.xlu2 %v630_v14, %s1746_s13 }
 0x1ad   :  { %v604_v20 = vpop.permute.xlu1 %603 }
 0x1ae   :  { %v2230_v23 = vmax.f32 %v2156_v0, %v604_v20 }
 0x1af   :  { %667 = vrot.lane.b32.xlu0 %v2186_v2, %s1738_s26  ;;  %713 = vrot.lane.b32.xlu1 %v631_v52, %s1742_s30 }
 0x1b0   :  { %643 = vrot.lane.b32.xlu2 %v2186_v2, %s1737_s2 }
 0x1b3   :  { %v624_v24 = vpop.permute.xlu0 %623 }
 0x1b4   :  { %v635_v26 = vmax.f32 %v2156_v0, %v624_v24  ;;  %v636_v28 = vmax.f32 %v2163_v9, %v624_v24 }
 0x1b7   :  { %748 = vrot.lane.b32.xlu0 %v632_v16, %s1744_s11  ;;  %736 = vrot.lane.b32.xlu1 %v632_v16, %s1743_s10 }
 0x1b8   :  { %679 = vrot.lane.b32.xlu2 %v2186_v2, %s1741_s29 }
 0x1bf   :  { %784 = vrot.lane.b32.xlu0 %v632_v16, %s1746_s13  ;;  %760 = vrot.lane.b32.xlu1 %v632_v16, %s1745_s12 }
 0x1c0   :  { %715 = vrot.lane.b32.xlu2 %v632_v16, %s1742_s30 }
 0x1c7   :  { %669 = vrot.lane.b32.xlu0 %v2211_v17, %s1738_s26  ;;  %645 = vrot.lane.b32.xlu1 %v2211_v17, %s1737_s2 }
 0x1c8   :  { %772 = vrot.lane.b32.xlu2 %v632_v16, %s1733_s15 }
 0x1cf   :  { %693 = vrot.lane.b32.xlu0 %v2211_v17, %s1740_s28  ;;  %681 = vrot.lane.b32.xlu1 %v2211_v17, %s1741_s29 }
 0x1d0   :  { %657 = vrot.lane.b32.xlu2 %v2211_v17, %s1739_s27 }
 0x1d3   :  { %v666_v25 = vpop.permute.xlu2 %665 }
 0x1d7   :  { %762 = vrot.lane.b32.xlu1 %v634_v18, %s1745_s12  ;;  %719 = vrot.lane.b32.xlu0 %v634_v18, %s1742_s30 }
 0x1d8   :  { %717 = vrot.lane.b32.xlu2 %v633_v19, %s1742_s30 }
 0x1df   :  { %671 = vrot.lane.b32.xlu1 %v2230_v23, %s1738_s26  ;;  %738 = vrot.lane.b32.xlu0 %v634_v18, %s1743_s10 }
 0x1e0   :  { %750 = vrot.lane.b32.xlu2 %v634_v18, %s1744_s11 }
 0x1e7   :  { %695 = vrot.lane.b32.xlu1 %v2230_v23, %s1740_s28  ;;  %774 = vrot.lane.b32.xlu0 %v634_v18, %s1733_s15 }
 0x1e8   :  { %647 = vrot.lane.b32.xlu2 %v2230_v23, %s1737_s2 }
 0x1eb   :  { %v654_v21 = vpop.permute.xlu0 %653 }
 0x1ec   :  { %v642_v29 = vpop.permute.xlu1 %641 }
 0x1ed   :  { %v795_v40 = vsel %vm794_vm12, %v2168_v11, %v642_v29 }
 0x1ee   :  { %v800_v43 = vsel %vm799_vm13, %v795_v40, %v654_v21 }
 0x1ef   :  { %721 = vrot.lane.b32.xlu1 %v635_v26, %s1742_s30  ;;  %659 = vrot.lane.b32.xlu0 %v2230_v23, %s1739_s27  ;;  %v805_v44 = vsel %vm804_vm14, %v800_v43, %v666_v25 }
 0x1f0   :  { %683 = vrot.lane.b32.xlu2 %v2230_v23, %s1741_s29 }
 0x1f2   :  { %v710_v27 = vpop.permute.xlu2 %709 }
 0x1f3   :  { %v690_v31 = vpop.permute.xlu0 %689 }
 0x1f4   :  { %v678_v32 = vpop.permute.xlu1 %677 }
 0x1f5   :  { %v810_v45 = vsel %vm809_vm15, %v805_v44, %v678_v32 }
 0x1f6   :  { %v815_v55 = vsel %vm814_vm5, %v810_v45, %v690_v31 }
 0x1f7   :  { %740 = vrot.lane.b32.xlu1 %v636_v28, %s1743_s10  ;;  %752 = vrot.lane.b32.xlu0 %v636_v28, %s1744_s11 }
 0x1f8   :  { %723 = vrot.lane.b32.xlu2 %v636_v28, %s1742_s30 }
 0x1fa   :  { %v747_v30 = vpop.permute.xlu2 %746 }
 0x1ff   :  { %776 = vrot.lane.b32.xlu1 %v636_v28, %s1733_s15  ;;  %788 = vrot.lane.b32.xlu0 %v636_v28, %s1746_s13  ;;  %s1747_s15 = smov 120  }
 0x200   :  { %764 = vrot.lane.b32.xlu2 %v636_v28, %s1745_s12  ;;  %s1749_s12 = smov 96  }
 0x202   :  { %v783_v34 = vpop.permute.xlu2 %782 }
 0x208   :  { %786 = vrot.lane.b32.xlu2 %v634_v18, %s1746_s13 }
 0x209   :  { %v712_v22 = vpop.permute.xlu0 %711  ;;  %v771_v35 = vpop.permute.xlu1 %770 }
 0x20a   :  { %v644_v36 = vpop.permute.xlu2 %643  ;;  %v726_v50 = vsel %vm725_vm4, %v710_v27, %v712_v22 }
 0x20b   :  { %v796_v51 = vsel %vm794_vm12, %v2186_v2, %v644_v36  ;;  %v820_v58 = vsel %vm819_vm6, %v815_v55, %v726_v50 }
 0x211   :  { %v735_v37 = vpop.permute.xlu0 %734  ;;  %v656_v38 = vpop.permute.xlu1 %655 }
 0x212   :  { %v680_v39 = vpop.permute.xlu2 %679  ;;  %v801_v54 = vsel %vm799_vm13, %v796_v51, %v656_v38  ;;  %v825_v59 = vsel %vm824_vm7, %v820_v58, %v735_v37  ;;  %v1006_v51 = vld [vmem:[%s3015_s3 + $0x2d0] sm:$0xff] }
 0x213   :  { %v830_v61 = vsel %vm829_vm11, %v825_v59, %v747_v30  ;;  %v946_v58 = vld [vmem:[%s3015_s3 + $0xf0] sm:$0xff] }
 0x214   :  { %v978_v59 = vld [vmem:[%s3015_s3 + $0x1f0] sm:$0xff]  ;;  %1077 = vmatpush.msrb.mxu1 %v946_v58 }
 0x215   :  { %1100 = vmatpush.msrb.mxu3 %v978_v59 }
 0x219   :  { %v759_v41 = vpop.permute.xlu0 %758  ;;  %v692_v49 = vpop.permute.xlu1 %691 }
 0x21a   :  { %v716_v42 = vpop.permute.xlu2 %715  ;;  %v835_v63 = vsel %vm834_vm10, %v830_v61, %v759_v41  ;;  %v1010_v41 = vld [vmem:[%s3015_s3 + $0x2f0] sm:$0xff]  ;;  %v944_v61 = vld [vmem:[%s3015_s3 + $0xe0] sm:$0xff] }
 0x21b   :  { %v840_v5 = vsel %vm839_vm9, %v835_v63, %v771_v35  ;;  %1123 = vmatpush.msrb.mxu0 %v1010_v41  ;;  %v1000_v63 = vld [vmem:[%s3015_s3 + $0x2a0] sm:$0xff]  ;;  %1078 = vmatpush.msrb.mxu1 %v944_v61 }
 0x21c   :  { %v845_v8 = vsel %vm844_vm8, %v840_v5, %v783_v34  ;;  %v998_v5 = vld [vmem:[%s3015_s3 + $0x290] sm:$0xff]  ;;  %v936_v41 = vld [vmem:[%s3015_s3 + $0xa0] sm:$0xff] }
 0x21d   :  { %v2279_v14 = vmax.f32 %v845_v8, 0.0 }
 0x21f   :  { %v869_v52 = vrot.slane %v2279_v14, 2  ;;  %v857_v56 = vrot.slane %v2279_v14, 1  ;;  %v881_v27 = vrot.slane %v2279_v14, 3  ;;  %v893_v58 = vrot.slane %v2279_v14, 4 }
 0x221   :  { %v668_v47 = vpop.permute.xlu0 %667  ;;  %v714_v48 = vpop.permute.xlu1 %713 }
 0x222   :  { %v773_v53 = vpop.permute.xlu2 %772  ;;  %v806_v57 = vsel %vm804_vm14, %v801_v54, %v668_v47  ;;  %v727_v4 = vsel %vm725_vm4, %v714_v48, %v716_v42 }
 0x223   :  { %v811_v60 = vsel %vm809_vm15, %v806_v57, %v680_v39  ;;  %v1002_v57 = vld [vmem:[%s3015_s3 + $0x2b0] sm:$0xff] }
 0x224   :  { %v816_v3 = vsel %vm814_vm5, %v811_v60, %v692_v49  ;;  %v1008_v49 = vld [vmem:[%s3015_s3 + $0x2e0] sm:$0xff] }
 0x225   :  { %v821_v6 = vsel %vm819_vm6, %v816_v3, %v727_v4  ;;  %1124 = vmatpush.msrb.mxu0 %v1008_v49  ;;  %v942_v3 = vld [vmem:[%s3015_s3 + $0xd0] sm:$0xff] }
 0x226   :  { %v974_v4 = vld [vmem:[%s3015_s3 + $0x1d0] sm:$0xff]  ;;  %1079 = vmatpush.msrb.mxu1 %v942_v3  ;;  %v956_v3 = vld [vmem:[%s3015_s3 + $0x140] sm:$0xff] }
 0x227   :  { %1125 = vmatpush.msrb.mxu0 %v1006_v51  ;;  %v964_v51 = vld [vmem:[%s3015_s3 + $0x180] sm:$0xff] }
 0x229   :  { %v749_v46 = vpop.permute.xlu0 %748  ;;  %v737_v62 = vpop.permute.xlu1 %736 }
 0x22a   :  { %v658_v0 = vpop.permute.xlu2 %657  ;;  %v826_v7 = vsel %vm824_vm7, %v821_v6, %v737_v62 }
 0x22b   :  { %v831_v11 = vsel %vm829_vm11, %v826_v7, %v749_v46  ;;  %v976_v46 = vld [vmem:[%s3015_s3 + $0x1e0] sm:$0xff] }
 0x22c   :  { %1101 = vmatpush.msrb.mxu3 %v976_v46  ;;  %v926_v46 = vld [vmem:[%s3015_s3 + $0x50] sm:$0xff] }
 0x22e   :  { %1102 = vmatpush.msrb.mxu3 %v974_v4  ;;  %v954_v4 = vld [vmem:[%s3015_s3 + $0x130] sm:$0xff] }
 0x231   :  { %v785_v9 = vpop.permute.xlu0 %784  ;;  %v761_v10 = vpop.permute.xlu1 %760 }
 0x232   :  { %v836_v12 = vsel %vm834_vm10, %v831_v11, %v761_v10  ;;  %v718_v13 = vpop.permute.xlu2 %717  ;;  %v996_v11 = vld [vmem:[%s3015_s3 + $0x280] sm:$0xff] }
 0x233   :  { %v841_v15 = vsel %vm839_vm9, %v836_v12, %v773_v53  ;;  %v1004_v53 = vld [vmem:[%s3015_s3 + $0x2c0] sm:$0xff] }
 0x234   :  { %v846_v2 = vsel %vm844_vm8, %v841_v15, %v785_v9  ;;  %1126 = vmatpush.msrb.mxu0 %v1004_v53  ;;  %v980_v53 = vld [vmem:[%s3015_s3 + $0x200] sm:$0xff] }
 0x235   :  { %v2283_v33 = vmax.f32 %v846_v2, 0.0  ;;  %v994_v2 = vld [vmem:[%s3015_s3 + $0x270] sm:$0xff] }
 0x236   :  { %1127 = vmatpush.msrb.mxu0 %v1002_v57  ;;  %v962_v57 = vld [vmem:[%s3015_s3 + $0x170] sm:$0xff] }
 0x237   :  { %v870_v16 = vrot.slane %v2283_v33, 2  ;;  %v858_v1 = vrot.slane %v2283_v33, 1  ;;  %v882_v26 = vrot.slane %v2283_v33, 3 }
 0x238   :  { %1128 = vmatpush.msrb.mxu0 %v1000_v63  ;;  %v924_v63 = vld [vmem:[%s3015_s3 + $0x40] sm:$0xff] }
 0x239   :  { %v670_v18 = vpop.permute.xlu0 %669  ;;  %v646_v19 = vpop.permute.xlu1 %645  ;;  %v871_v20 = vsel %vm82_vm2, %v869_v52, %v870_v16  ;;  %v859_v24 = vsel %vm49_vm0, %v857_v56, %v858_v1  ;;  %v883_v29 = vsel %vm115_vm1, %v881_v27, %v882_v26  ;;  %v992_v1 = vld [vmem:[%s3015_s3 + $0x260] sm:$0xff] }
 0x23a   :  { %v751_v25 = vpop.permute.xlu2 %750  ;;  %875 = vrot.lane.b32.xlu2 %v871_v20, %s1735_s23  ;;  %863 = vrot.lane.b32.xlu1 %v859_v24, %s1747_s15  ;;  %v797_v39 = vsel %vm794_vm12, %v2211_v17, %v646_v19 }
 0x23b   :  { %v802_v40 = vsel %vm799_vm13, %v797_v39, %v658_v0  ;;  %1129 = vmatpush.msrb.mxu0 %v998_v5  ;;  %v920_v5 = vld [vmem:[%s3015_s3 + $0x20] sm:$0xff] }
 0x23c   :  { %v807_v42 = vsel %vm804_vm14, %v802_v40, %v670_v18  ;;  %v990_v18 = vld [vmem:[%s3015_s3 + $0x250] sm:$0xff] }
 0x23d   :  { %1130 = vmatpush.msrb.mxu0 %v996_v11  ;;  %v1042_v11 = vld [vmem:[%s3015_s3 + $0x3f0] sm:$0xff] }
 0x23e   :  { %1146 = vmatpush.msrb.mxu2 %v1042_v11  ;;  %v919_v11 = vld [vmem:[%s3015_s3 + $0x18] sm:$0xff] }
 0x23f   :  { %1131 = vmatpush.msrb.mxu0 %v994_v2  ;;  %v947_v2 = vld [vmem:[%s3015_s3 + $0xf8] sm:$0xff] }
 0x241   :  { %v694_v28 = vpop.permute.xlu0 %693  ;;  %v682_v21 = vpop.permute.xlu1 %681  ;;  %1132 = vmatpush.msrb.mxu0 %v992_v1 }
 0x242   :  { %v648_v30 = vpop.permute.xlu2 %647  ;;  %887 = vrot.lane.b32.xlu2 %v883_v29, %s1748_s14  ;;  %v812_v44 = vsel %vm809_vm15, %v807_v42, %v682_v21  ;;  %v940_v21 = vld [vmem:[%s3015_s3 + $0xc0] sm:$0xff] }
 0x243   :  { %v798_v17 = vsel %vm794_vm12, %v2230_v23, %v648_v30  ;;  %v817_v55 = vsel %vm814_vm5, %v812_v44, %v694_v28  ;;  %1133 = vmatpush.msrb.mxu0 %v990_v18  ;;  %v972_v29 = vld [vmem:[%s3015_s3 + $0x1c0] sm:$0xff]  ;;  %1080 = vmatpush.msrb.mxu1 %v940_v21  ;;  %v1034_v18 = vld [vmem:[%s3015_s3 + $0x3b0] sm:$0xff]  ;;  %vm3029_vm12 = vcmask 1041408  }
 0x244   :  { %v988_v30 = vld [vmem:[%s3015_s3 + $0x240] sm:$0xff]  ;;  %1103 = vmatpush.msrb.mxu3 %v972_v29 }
 0x245   :  { %1134 = vmatpush.msrb.mxu0 %v988_v30  ;;  %v984_v44 = vld [vmem:[%s3015_s3 + $0x220] sm:$0xff] }
 0x246   :  { %v1028_v29 = vld [vmem:[%s3015_s3 + $0x380] sm:$0xff] }
 0x247   :  { %v1060_v30 = vld [vmem:[%s3015_s3 + $0x480] sm:$0xff] }
 0x249   :  { %v763_v31 = vpop.permute.xlu1 %762  ;;  %v720_v32 = vpop.permute.xlu0 %719 }
 0x24a   :  { %v684_v34 = vpop.permute.xlu2 %683  ;;  %v728_v48 = vsel %vm725_vm4, %v718_v13, %v720_v32 }
 0x24b   :  { %v822_v60 = vsel %vm819_vm6, %v817_v55, %v728_v48 }
 0x251   :  { %v672_v22 = vpop.permute.xlu1 %671  ;;  %v739_v35 = vpop.permute.xlu0 %738 }
 0x252   :  { %v724_v36 = vpop.permute.xlu2 %723  ;;  %v827_v62 = vsel %vm824_vm7, %v822_v60, %v739_v35  ;;  %v986_v35 = vld [vmem:[%s3015_s3 + $0x230] sm:$0xff]  ;;  %v960_v60 = vld [vmem:[%s3015_s3 + $0x160] sm:$0xff] }
 0x253   :  { %v832_v6 = vsel %vm829_vm11, %v827_v62, %v751_v25  ;;  %1135 = vmatpush.msrb.mxu0 %v986_v35  ;;  %v958_v62 = vld [vmem:[%s3015_s3 + $0x150] sm:$0xff]  ;;  %v1056_v35 = vld [vmem:[%s3015_s3 + $0x460] sm:$0xff] }
 0x254   :  { %v837_v15 = vsel %vm834_vm10, %v832_v6, %v763_v31  ;;  %v952_v6 = vld [vmem:[%s3015_s3 + $0x120] sm:$0xff] }
 0x255   :  { %1136 = vmatpush.msrb.mxu0 %v984_v44  ;;  %v1007_v44 = vld [vmem:[%s3015_s3 + $0x2d8] sm:$0xff] }
 0x259   :  { %v696_v37 = vpop.permute.xlu1 %695  ;;  %v775_v38 = vpop.permute.xlu0 %774 }
 0x25a   :  { %v765_v43 = vpop.permute.xlu2 %764  ;;  %v842_v52 = vsel %vm839_vm9, %v837_v15, %v775_v38  ;;  %v1064_v15 = vld [vmem:[%s3015_s3 + $0x4a0] sm:$0xff] }
 0x261   :  { %v722_v45 = vpop.permute.xlu1 %721  ;;  %v660_v47 = vpop.permute.xlu0 %659 }
 0x262   :  { %v803_v50 = vsel %vm799_vm13, %v798_v17, %v660_v47  ;;  %v729_v7 = vsel %vm725_vm4, %v722_v45, %v724_v36  ;;  %v787_v12 = vpop.permute.xlu2 %786  ;;  %v934_v17 = vld [vmem:[%s3015_s3 + $0x90] sm:$0xff] }
 0x263   :  { %v808_v54 = vsel %vm804_vm14, %v803_v50, %v672_v22  ;;  %v847_v16 = vsel %vm844_vm8, %v842_v52, %v787_v12  ;;  %v970_v22 = vld [vmem:[%s3015_s3 + $0x1b0] sm:$0xff]  ;;  %v932_v50 = vld [vmem:[%s3015_s3 + $0x80] sm:$0xff]  ;;  %vm3030_vm14 = vcmask 1042432  }
 0x264   :  { %v813_v23 = vsel %vm809_vm15, %v808_v54, %v684_v34  ;;  %v2371_v19 = vmax.f32 %v847_v16, 0.0  ;;  %v938_v34 = vld [vmem:[%s3015_s3 + $0xb0] sm:$0xff]  ;;  %1104 = vmatpush.msrb.mxu3 %v970_v22  ;;  %v894_v54 = vrot.slane %v2283_v33, 4  ;;  %v928_v33 = vld [vmem:[%s3015_s3 + $0x60] sm:$0xff]  ;;  %v945_v16 = vld [vmem:[%s3015_s3 + $0xe8] sm:$0xff] }
 0x265   :  { %v818_v0 = vsel %vm814_vm5, %v813_v23, %v696_v37  ;;  %1081 = vmatpush.msrb.mxu1 %v938_v34  ;;  %v966_v45 = vld [vmem:[%s3015_s3 + $0x190] sm:$0xff]  ;;  %v1040_v12 = vld [vmem:[%s3015_s3 + $0x3e0] sm:$0xff]  ;;  %v941_v34 = vld [vmem:[%s3015_s3 + $0xc8] sm:$0xff] }
 0x266   :  { %v823_v10 = vsel %vm819_vm6, %v818_v0, %v729_v7  ;;  %v896_v31 = vrot.slane %v2371_v19, 4  ;;  %v872_v32 = vrot.slane %v2371_v19, 2  ;;  %v860_v38 = vrot.slane %v2371_v19, 1  ;;  %v982_v47 = vld [vmem:[%s3015_s3 + $0x210] sm:$0xff]  ;;  %1147 = vmatpush.msrb.mxu2 %v1040_v12  ;;  %v1024_v22 = vld [vmem:[%s3015_s3 + $0x360] sm:$0xff]  ;;  %v971_v12 = vld [vmem:[%s3015_s3 + $0x1b8] sm:$0xff] }
 0x267   :  { %1082 = vmatpush.msrb.mxu1 %v936_v41  ;;  %1137 = vmatpush.msrb.mxu0 %v982_v47  ;;  %v884_v55 = vrot.slane %v2371_v19, 3  ;;  %v930_v23 = vld [vmem:[%s3015_s3 + $0x70] sm:$0xff]  ;;  %v895_v61 = vsel %vm148_vm3, %v893_v58, %v894_v54  ;;  %v1011_v41 = vld [vmem:[%s3015_s3 + $0x2f8] sm:$0xff]  ;;  %v933_v47 = vld [vmem:[%s3015_s3 + $0x88] sm:$0xff] }
 0x268   :  { %v922_v0 = vld [vmem:[%s3015_s3 + $0x30] sm:$0xff]  ;;  %v1003_v54 = vld [vmem:[%s3015_s3 + $0x2b8] sm:$0xff]  ;;  %v1001_v58 = vld [vmem:[%s3015_s3 + $0x2a8] sm:$0xff] }
 0x269   :  { %v741_v8 = vpop.permute.xlu1 %740  ;;  %v753_v9 = vpop.permute.xlu0 %752  ;;  %1083 = vmatpush.msrb.mxu1 %v934_v17  ;;  %1138 = vmatpush.msrb.mxu0 %v980_v53  ;;  %v918_v7 = vld [vmem:[%s3015_s3 + $0x10] sm:$0xff]  ;;  %v931_v53 = vld [vmem:[%s3015_s3 + $0x78] sm:$0xff] }
 0x26a   :  { %v828_v13 = vsel %vm824_vm7, %v823_v10, %v741_v8  ;;  %v950_v8 = vld [vmem:[%s3015_s3 + $0x110] sm:$0xff]  ;;  %v948_v10 = vld [vmem:[%s3015_s3 + $0x100] sm:$0xff] }
 0x26b   :  { %v833_v56 = vsel %vm829_vm11, %v828_v13, %v753_v9  ;;  %1084 = vmatpush.msrb.mxu1 %v932_v50  ;;  %v916_v9 = vld [vmem:[%s3015_s3] sm:$0xff]  ;;  %v1038_v13 = vld [vmem:[%s3015_s3 + $0x3d0] sm:$0xff]  ;;  %1238 = vmatpush.msra.mxu0 %v1011_v41  ;;  %v959_v41 = vld [vmem:[%s3015_s3 + $0x158] sm:$0xff] }
 0x26c   :  { %v838_v24 = vsel %vm834_vm10, %v833_v56, %v765_v43  ;;  %v968_v43 = vld [vmem:[%s3015_s3 + $0x1a0] sm:$0xff]  ;;  %v1062_v52 = vld [vmem:[%s3015_s3 + $0x490] sm:$0xff]  ;;  %1148 = vmatpush.msrb.mxu2 %v1038_v13  ;;  %v995_v13 = vld [vmem:[%s3015_s3 + $0x278] sm:$0xff]  ;;  %vm3028_vm10 = vcmask 1040384  }
 0x26d   :  { %1105 = vmatpush.msrb.mxu3 %v968_v43  ;;  %1085 = vmatpush.msrb.mxu1 %v930_v23  ;;  %v1036_v56 = vld [vmem:[%s3015_s3 + $0x3c0] sm:$0xff]  ;;  %v935_v43 = vld [vmem:[%s3015_s3 + $0x98] sm:$0xff]  ;;  %v1018_v17 = vld [vmem:[%s3015_s3 + $0x330] sm:$0xff] }
 0x26e   :  { %1149 = vmatpush.msrb.mxu2 %v1036_v56  ;;  %v1016_v50 = vld [vmem:[%s3015_s3 + $0x320] sm:$0xff]  ;;  %v1046_v23 = vld [vmem:[%s3015_s3 + $0x410] sm:$0xff]  ;;  %v1033_v56 = vld [vmem:[%s3015_s3 + $0x3a8] sm:$0xff] }
 0x26f   :  { %1106 = vmatpush.msrb.mxu3 %v966_v45  ;;  %1086 = vmatpush.msrb.mxu1 %v928_v33  ;;  %v1050_v45 = vld [vmem:[%s3015_s3 + $0x430] sm:$0xff]  ;;  %v1012_v33 = vld [vmem:[%s3015_s3 + $0x300] sm:$0xff]  ;;  %vm3031_vm7 = vmmov %vm3028_vm10 }
 0x270   :  { %1150 = vmatpush.msrb.mxu2 %v1034_v18  ;;  %v967_v18 = vld [vmem:[%s3015_s3 + $0x198] sm:$0xff] }
 0x271   :  { %v777_v20 = vpop.permute.xlu1 %776  ;;  %v789_v25 = vpop.permute.xlu0 %788  ;;  %1107 = vmatpush.msrb.mxu3 %v964_v51  ;;  %1087 = vmatpush.msrb.mxu1 %v926_v46  ;;  %v1048_v51 = vld [vmem:[%s3015_s3 + $0x420] sm:$0xff]  ;;  %v1043_v46 = vld [vmem:[%s3015_s3 + $0x3f8] sm:$0xff] }
 0x272   :  { %v843_v26 = vsel %vm839_vm9, %v838_v24, %v777_v20  ;;  %v1032_v20 = vld [vmem:[%s3015_s3 + $0x3a0] sm:$0xff]  ;;  %v1030_v24 = vld [vmem:[%s3015_s3 + $0x390] sm:$0xff]  ;;  %vm1072_vm9 = vcmask 719872  }
 0x273   :  { %v848_v27 = vsel %vm844_vm8, %v843_v26, %v789_v25  ;;  %1108 = vmatpush.msrb.mxu3 %v962_v57  ;;  %1088 = vmatpush.msrb.mxu1 %v924_v63  ;;  %v929_v57 = vld [vmem:[%s3015_s3 + $0x68] sm:$0xff]  ;;  %vm913_vm8 = vcmask 785408  }
 0x274   :  { %v852_v28 = vmax.f32 %v848_v27, 0.0  ;;  %1151 = vmatpush.msrb.mxu2 %v1032_v20  ;;  %v925_v63 = vld [vmem:[%s3015_s3 + $0x48] sm:$0xff]  ;;  %v991_v20 = vld [vmem:[%s3015_s3 + $0x258] sm:$0xff] }
 0x275   :  { %1109 = vmatpush.msrb.mxu3 %v960_v60  ;;  %1089 = vmatpush.msrb.mxu1 %v922_v0  ;;  %v927_v60 = vld [vmem:[%s3015_s3 + $0x58] sm:$0xff]  ;;  %v1041_v0 = vld [vmem:[%s3015_s3 + $0x3e8] sm:$0xff] }
 0x276   :  { %v897_v36 = vrot.slane %v852_v28, 4  ;;  %v873_v37 = vrot.slane %v852_v28, 2  ;;  %v861_v39 = vrot.slane %v852_v28, 1  ;;  %v885_v48 = vrot.slane %v852_v28, 3  ;;  %1152 = vmatpush.msrb.mxu2 %v1030_v24  ;;  %v1031_v24 = vld [vmem:[%s3015_s3 + $0x398] sm:$0xff] }
 0x277   :  { %1110 = vmatpush.msrb.mxu3 %v958_v62  ;;  %1090 = vmatpush.msrb.mxu1 %v920_v5  ;;  %v999_v62 = vld [vmem:[%s3015_s3 + $0x298] sm:$0xff] }
 0x278   :  { %v898_v49 = vsel %vm148_vm3, %v896_v31, %v897_v36  ;;  %v874_v40 = vsel %vm82_vm2, %v872_v32, %v873_v37  ;;  %v862_v42 = vsel %vm49_vm0, %v860_v38, %v861_v39  ;;  %v886_v59 = vsel %vm115_vm1, %v884_v55, %v885_v48  ;;  %1153 = vmatpush.msrb.mxu2 %v1028_v29  ;;  %v1026_v31 = vld [vmem:[%s3015_s3 + $0x370] sm:$0xff]  ;;  %v939_v36 = vld [vmem:[%s3015_s3 + $0xb8] sm:$0xff]  ;;  %v937_v39 = vld [vmem:[%s3015_s3 + $0xa8] sm:$0xff] }
 0x279   :  { %901 = vrot.lane.b32.xlu2 %v898_v49, %s1749_s12  ;;  %877 = vrot.lane.b32.xlu1 %v874_v40, %s1735_s23  ;;  %vm910_vm0 = vcmask 850944   ;;  %vm905_vm1 = vcmask 982016   ;;  %vm3026_vm2 = vcmask 916480   ;;  %v1058_v32 = vld [vmem:[%s3015_s3 + $0x470] sm:$0xff]  ;;  %v1020_v49 = vld [vmem:[%s3015_s3 + $0x340] sm:$0xff] }
 0x27a   :  { %865 = vrot.lane.b32.xlu0 %v862_v42, %s1747_s15  ;;  %1111 = vmatpush.msrb.mxu3 %v956_v3  ;;  %v1022_v37 = vld [vmem:[%s3015_s3 + $0x350] sm:$0xff]  ;;  %v1052_v40 = vld [vmem:[%s3015_s3 + $0x440] sm:$0xff]  ;;  %v1009_v42 = vld [vmem:[%s3015_s3 + $0x2e8] sm:$0xff] }
 0x27b   :  { %1091 = vmatpush.msrb.mxu1 %v918_v7  ;;  %1154 = vmatpush.msrb.mxu2 %v1026_v31  ;;  %v1054_v38 = vld [vmem:[%s3015_s3 + $0x450] sm:$0xff]  ;;  %v1005_v48 = vld [vmem:[%s3015_s3 + $0x2c8] sm:$0xff]  ;;  %v975_v5 = vld [vmem:[%s3015_s3 + $0x1d8] sm:$0xff] }
 0x27c   :  { %1112 = vmatpush.msrb.mxu3 %v954_v4  ;;  %1239 = vmatpush.msra.mxu0 %v1009_v42  ;;  %v1014_v55 = vld [vmem:[%s3015_s3 + $0x310] sm:$0xff]  ;;  %v977_v3 = vld [vmem:[%s3015_s3 + $0x1e8] sm:$0xff]  ;;  %v923_v4 = vld [vmem:[%s3015_s3 + $0x38] sm:$0xff] }
 0x27d   :  { %1092 = vmatpush.msrb.mxu1 %v916_v9  ;;  %1155 = vmatpush.msrb.mxu2 %v1024_v22  ;;  %v921_v7 = vld [vmem:[%s3015_s3 + $0x28] sm:$0xff]  ;;  %v1027_v22 = vld [vmem:[%s3015_s3 + $0x378] sm:$0xff]  ;;  %vm3027_vm3 = vmmov %vm3026_vm2 }
 0x27e   :  { %1113 = vmatpush.msrb.mxu3 %v952_v6  ;;  %1240 = vmatpush.msra.mxu0 %v1007_v44  ;;  %v1039_v6 = vld [vmem:[%s3015_s3 + $0x3d8] sm:$0xff]  ;;  %v997_v9 = vld [vmem:[%s3015_s3 + $0x288] sm:$0xff] }
 0x27f   :  { %1174 = vmatpush.msra.mxu1 %v1064_v15  ;;  %1156 = vmatpush.msrb.mxu2 %v1022_v37  ;;  %v1035_v15 = vld [vmem:[%s3015_s3 + $0x3b8] sm:$0xff]  ;;  %v965_v29 = vld [vmem:[%s3015_s3 + $0x188] sm:$0xff] }
 0x280   :  { %1114 = vmatpush.msrb.mxu3 %v950_v8  ;;  %1241 = vmatpush.msra.mxu0 %v1005_v48  ;;  %v973_v8 = vld [vmem:[%s3015_s3 + $0x1c8] sm:$0xff]  ;;  %v1055_v42 = vld [vmem:[%s3015_s3 + $0x458] sm:$0xff] }
 0x281   :  { %889 = vrot.lane.b32.xlu1 %v886_v59, %s1748_s14  ;;  %1175 = vmatpush.msra.mxu1 %v1062_v52  ;;  %v1044_v59 = vld [vmem:[%s3015_s3 + $0x400] sm:$0xff]  ;;  %v969_v52 = vld [vmem:[%s3015_s3 + $0x1a8] sm:$0xff]  ;;  %v1019_v48 = vld [vmem:[%s3015_s3 + $0x338] sm:$0xff] }
 0x282   :  { %899 = vrot.lane.b32.xlu0 %v895_v61, %s1749_s12  ;;  %1115 = vmatpush.msrb.mxu3 %v948_v10  ;;  %v979_v61 = vld [vmem:[%s3015_s3 + $0x1f8] sm:$0xff]  ;;  %v1037_v10 = vld [vmem:[%s3015_s3 + $0x3c8] sm:$0xff] }
 0x283   :  { %1176 = vmatpush.msra.mxu1 %v1060_v30  ;;  %1157 = vmatpush.msrb.mxu2 %v1020_v49  ;;  %v989_v30 = vld [vmem:[%s3015_s3 + $0x248] sm:$0xff]  ;;  %v983_v49 = vld [vmem:[%s3015_s3 + $0x218] sm:$0xff] }
 0x284   :  { %1192 = vmatpush.msra.mxu3 %v947_v2  ;;  %1242 = vmatpush.msra.mxu0 %v1003_v54  ;;  %v917_v2 = vld [vmem:[%s3015_s3 + $0x8] sm:$0xff] }
 0x285   :  { %1177 = vmatpush.msra.mxu1 %v1058_v32  ;;  %1158 = vmatpush.msrb.mxu2 %v1018_v17  ;;  %v1061_v31 = vld [vmem:[%s3015_s3 + $0x488] sm:$0xff]  ;;  %v963_v32 = vld [vmem:[%s3015_s3 + $0x178] sm:$0xff] }
 0x286   :  { %1193 = vmatpush.msra.mxu3 %v945_v16  ;;  %1243 = vmatpush.msra.mxu0 %v1001_v58  ;;  %v993_v16 = vld [vmem:[%s3015_s3 + $0x268] sm:$0xff] }
 0x287   :  { %1178 = vmatpush.msra.mxu1 %v1056_v35  ;;  %1159 = vmatpush.msrb.mxu2 %v1016_v50  ;;  %v1059_v35 = vld [vmem:[%s3015_s3 + $0x478] sm:$0xff]  ;;  %v985_v37 = vld [vmem:[%s3015_s3 + $0x228] sm:$0xff] }
 0x288   :  { %1244 = vmatpush.msra.mxu0 %v999_v62  ;;  %v981_v44 = vld [vmem:[%s3015_s3 + $0x208] sm:$0xff]  ;;  %v1051_v50 = vld [vmem:[%s3015_s3 + $0x438] sm:$0xff] }
 0x289   :  { %1179 = vmatpush.msra.mxu1 %v1054_v38  ;;  %1160 = vmatpush.msrb.mxu2 %v1014_v55  ;;  %v1025_v38 = vld [vmem:[%s3015_s3 + $0x368] sm:$0xff]  ;;  %v951_v55 = vld [vmem:[%s3015_s3 + $0x118] sm:$0xff] }
 0x28a   :  { %1245 = vmatpush.msra.mxu0 %v997_v9  ;;  %v1021_v17 = vld [vmem:[%s3015_s3 + $0x348] sm:$0xff] }
 0x28b   :  { %1180 = vmatpush.msra.mxu1 %v1052_v40  ;;  %1161 = vmatpush.msrb.mxu2 %v1012_v33  ;;  %v1023_v40 = vld [vmem:[%s3015_s3 + $0x358] sm:$0xff]  ;;  %v1049_v54 = vld [vmem:[%s3015_s3 + $0x428] sm:$0xff] }
 0x28c   :  { %1246 = vmatpush.msra.mxu0 %v995_v13  ;;  %v949_v58 = vld [vmem:[%s3015_s3 + $0x108] sm:$0xff] }
 0x28d   :  { %1181 = vmatpush.msra.mxu1 %v1050_v45  ;;  %1261 = vmatpush.msra.mxu2 %v1043_v46  ;;  %v1053_v45 = vld [vmem:[%s3015_s3 + $0x448] sm:$0xff] }
 0x28e   :  { %1247 = vmatpush.msra.mxu0 %v993_v16  ;;  %v1013_v33 = vld [vmem:[%s3015_s3 + $0x308] sm:$0xff] }
 0x28f   :  { %1182 = vmatpush.msra.mxu1 %v1048_v51  ;;  %1262 = vmatpush.msra.mxu2 %v1041_v0  ;;  %v953_v51 = vld [vmem:[%s3015_s3 + $0x128] sm:$0xff] }
 0x290   :  { %1248 = vmatpush.msra.mxu0 %v991_v20 }
 0x291   :  { %1183 = vmatpush.msra.mxu1 %v1046_v23  ;;  %1263 = vmatpush.msra.mxu2 %v1039_v6  ;;  %v1015_v23 = vld [vmem:[%s3015_s3 + $0x318] sm:$0xff] }
 0x292   :  { %1249 = vmatpush.msra.mxu0 %v989_v30 }
 0x293   :  { %1184 = vmatpush.msra.mxu1 %v1044_v59  ;;  %1264 = vmatpush.msra.mxu2 %v1037_v10  ;;  %v1045_v59 = vld [vmem:[%s3015_s3 + $0x408] sm:$0xff] }
 0x294   :  { %v876_v1 = vpop.permute.xlu2 %875 }
 0x295   :  { %1265 = vmatpush.msra.mxu2 %v1035_v15 }
 0x297   :  { %1266 = vmatpush.msra.mxu2 %v1033_v56 }
 0x299   :  { %1267 = vmatpush.msra.mxu2 %v1031_v24 }
 0x29c   :  { %v2518_v25 = vpop.permute.xlu2 %887 }
 0x29d   :  { %v2522_v26 = vsel %vm910_vm0, %v876_v1, %v2518_v25 }
 0x29e   :  { %1139 = vmatmul.f32.vlgmr.msrb.gmra.mxu0 %v2522_v26 }
 0x2ac   :  { %v864_v27 = vpop.permute.xlu1 %863 }
 0x2ad   :  { %v2527_v28 = vsel %vm905_vm1, %v2279_v14, %v864_v27  ;;  %v2530_v21 = vsel %vm3026_vm2, %v864_v27, %v876_v1  ;;  %v943_v14 = vld [vmem:[%s3015_s3 + $0xd8] sm:$0xff]  ;;  %v1065_v1 = vld [vmem:[%s3015_s3 + $0x4a8] sm:$0xff]  ;;  %vm3034_vm2 = vmmov %vm3031_vm7 }
 0x2ae   :  { %1093 = vmatmul.f32.vlgmr.msrb.gmra.mxu1 %v2527_v28  ;;  %1116 = vmatmul.f32.vlgmr.msrb.gmra.mxu3 %v2530_v21  ;;  %v1063_v27 = vld [vmem:[%s3015_s3 + $0x498] sm:$0xff] }
 0x2af   :  { %1194 = vmatpush.msra.mxu3 %v943_v14  ;;  %1215 = vmatpush.msrb.mxu1 %v979_v61  ;;  %v1029_v14 = vld [vmem:[%s3015_s3 + $0x388] sm:$0xff] }
 0x2b0   :  { %1268 = vmatpush.msra.mxu2 %v1029_v14 }
 0x2b1   :  { %1195 = vmatpush.msra.mxu3 %v941_v34  ;;  %1216 = vmatpush.msrb.mxu1 %v977_v3  ;;  %v987_v34 = vld [vmem:[%s3015_s3 + $0x238] sm:$0xff] }
 0x2b2   :  { %1250 = vmatpush.msra.mxu0 %v987_v34  ;;  %1269 = vmatpush.msra.mxu2 %v1027_v22 }
 0x2b3   :  { %1196 = vmatpush.msra.mxu3 %v939_v36  ;;  %1217 = vmatpush.msrb.mxu1 %v975_v5  ;;  %v961_v36 = vld [vmem:[%s3015_s3 + $0x168] sm:$0xff] }
 0x2b4   :  { %1251 = vmatpush.msra.mxu0 %v985_v37  ;;  %1270 = vmatpush.msra.mxu2 %v1025_v38 }
 0x2b5   :  { %1197 = vmatpush.msra.mxu3 %v937_v39  ;;  %1218 = vmatpush.msrb.mxu1 %v973_v8  ;;  %v1057_v39 = vld [vmem:[%s3015_s3 + $0x468] sm:$0xff] }
 0x2b6   :  { %1252 = vmatpush.msra.mxu0 %v983_v49  ;;  %1271 = vmatpush.msra.mxu2 %v1023_v40 }
 0x2b7   :  { %1198 = vmatpush.msra.mxu3 %v935_v43  ;;  %1219 = vmatpush.msrb.mxu1 %v971_v12  ;;  %v957_v43 = vld [vmem:[%s3015_s3 + $0x148] sm:$0xff] }
 0x2b8   :  { %1253 = vmatpush.msra.mxu0 %v981_v44  ;;  %1272 = vmatpush.msra.mxu2 %v1021_v17 }
 0x2b9   :  { %1199 = vmatpush.msra.mxu3 %v933_v47  ;;  %1220 = vmatpush.msrb.mxu1 %v969_v52  ;;  %v955_v47 = vld [vmem:[%s3015_s3 + $0x138] sm:$0xff] }
 0x2ba   :  { %1273 = vmatpush.msra.mxu2 %v1019_v48 }
 0x2bb   :  { %1200 = vmatpush.msra.mxu3 %v931_v53  ;;  %1221 = vmatpush.msrb.mxu1 %v967_v18  ;;  %v1017_v53 = vld [vmem:[%s3015_s3 + $0x328] sm:$0xff] }
 0x2bc   :  { %1274 = vmatpush.msra.mxu2 %v1017_v53 }
 0x2bd   :  { %1201 = vmatpush.msra.mxu3 %v929_v57  ;;  %1222 = vmatpush.msrb.mxu1 %v965_v29  ;;  %v1047_v57 = vld [vmem:[%s3015_s3 + $0x418] sm:$0xff] }
 0x2be   :  { %1275 = vmatpush.msra.mxu2 %v1015_v23 }
 0x2bf   :  { %1202 = vmatpush.msra.mxu3 %v927_v60  ;;  %1223 = vmatpush.msrb.mxu1 %v963_v32 }
 0x2c0   :  { %1276 = vmatpush.msra.mxu2 %v1013_v33 }
 0x2c1   :  { %1203 = vmatpush.msra.mxu3 %v925_v63  ;;  %1224 = vmatpush.msrb.mxu1 %v961_v36 }
 0x2c3   :  { %1204 = vmatpush.msra.mxu3 %v923_v4  ;;  %1225 = vmatpush.msrb.mxu1 %v959_v41 }
 0x2c5   :  { %1205 = vmatpush.msra.mxu3 %v921_v7  ;;  %1226 = vmatpush.msrb.mxu1 %v957_v43 }
 0x2c7   :  { %1206 = vmatpush.msra.mxu3 %v919_v11  ;;  %1227 = vmatpush.msrb.mxu1 %v955_v47 }
 0x2c9   :  { %1207 = vmatpush.msra.mxu3 %v917_v2  ;;  %1228 = vmatpush.msrb.mxu1 %v953_v51 }
 0x2cb   :  { %1289 = vmatpush.msrb.mxu3 %v1065_v1  ;;  %1229 = vmatpush.msrb.mxu1 %v951_v55 }
 0x2cd   :  { %1290 = vmatpush.msrb.mxu3 %v1063_v27  ;;  %1230 = vmatpush.msrb.mxu1 %v949_v58 }
 0x2cf   :  { %1291 = vmatpush.msrb.mxu3 %v1061_v31 }
 0x2d1   :  { %1292 = vmatpush.msrb.mxu3 %v1059_v35 }
 0x2d3   :  { %1293 = vmatpush.msrb.mxu3 %v1057_v39  ;;  %v902_v5 = vpop.permute.xlu2 %901 }
 0x2d5   :  { %1294 = vmatpush.msrb.mxu3 %v1055_v42 }
 0x2d7   :  { %1295 = vmatpush.msrb.mxu3 %v1053_v45 }
 0x2d9   :  { %1296 = vmatpush.msrb.mxu3 %v1051_v50 }
 0x2db   :  { %1297 = vmatpush.msrb.mxu3 %v1049_v54 }
 0x2dd   :  { %1298 = vmatpush.msrb.mxu3 %v1047_v57 }
 0x2df   :  { %1299 = vmatpush.msrb.mxu3 %v1045_v59 }
 0x2eb   :  { %v878_v60 = vpop.permute.xlu1 %877 }
 0x2ec   :  { %v866_v61 = vpop.permute.xlu0 %865 }
 0x2ed   :  { %v907_v46 = vsel %vm905_vm1, %v2371_v19, %v866_v61  ;;  %v909_v62 = vsel %vm3027_vm3, %v866_v61, %v878_v60  ;;  %vm3033_vm1 = vmmov %vm3030_vm14 }
 0x2ee   :  { %1096 = vmatmul.f32.gmra.mxu1 %v907_v46  ;;  %1119 = vmatmul.f32.gmra.mxu3 %v909_v62 }
 0x2f3   :  { %v890_v63 = vpop.permute.xlu1 %889 }
 0x2f4   :  { %v900_v3 = vpop.permute.xlu0 %899  ;;  %v912_v0 = vsel %vm910_vm0, %v878_v60, %v890_v63  ;;  %v915_v19 = vsel %vm913_vm8, %v890_v63, %v902_v5  ;;  %vm3032_vm0 = vmmov %vm3029_vm12 }
 0x2f5   :  { %1142 = vmatmul.f32.gmra.mxu0 %v912_v0  ;;  %v914_v4 = vsel %vm913_vm8, %v2518_v25, %v900_v3  ;;  %vm3035_vm3 = vmmov %vm3032_vm0 }
 0x2f6   :  { %1162 = vmatmul.f32.vlgmr.msrb.gmra.mxu2 %v914_v4  ;;  %1639 = vmatmul.msk.f32.vlgmr.msra.gmra.mxu1 %vm1072_vm9, %v900_v3  ;;  %vm3036_vm8 = vmmov %vm3033_vm1 }
 0x2f7   :  { %1208 = vmatmul.f32.vlgmr.msra.gmra.mxu3 %v2527_v28 }
 0x2fd   :  { %1254 = vmatmul.f32.vlgmr.msra.gmra.mxu0 %v2522_v26  ;;  %v1066_v26 = vld [vmem:[%s3016_s4] sm:$0x3] }
 0x2fe   :  { %1165 = vmatmul.f32.gmra.mxu2 %v915_v19  ;;  %1640 = vmatmul.msk.f32.gmra.mxu1 %vm1072_vm9, %v902_v5  ;;  %v1068_v7 = vperm.slane %v1066_v26, 0  ;;  %v1069_v24 = vperm.slane %v1066_v26, 1 }
 0x2ff   :  { %1211 = vmatmul.f32.gmra.mxu3 %v907_v46 }
 0x305   :  { %1257 = vmatmul.f32.gmra.mxu0 %v912_v0 }
 0x306   :  { %1231 = vmatmul.f32.vlgmr.msrb.gmra.mxu1 %v2530_v21  ;;  %1277 = vmatmul.f32.vlgmr.msra.gmra.mxu2 %v914_v4 }
 0x307   :  { %1641 = vmatmul.msk.f32.vlgmr.msrb.gmra.mxu3 %vm1072_vm9, %v900_v3 }
 0x30e   :  { %1234 = vmatmul.f32.gmra.mxu1 %v909_v62  ;;  %1280 = vmatmul.f32.gmra.mxu2 %v915_v19 }
 0x30f   :  { %1642 = vmatmul.msk.f32.gmra.mxu3 %vm1072_vm9, %v902_v5  ;;  %vm3037_vm9 = vmmov %vm3034_vm2 }
 0x31b   :  { %v1140_v10 = vpop.f32.mrf.mxu0 }
 0x32b   :  { %v1094_v25 = vpop.f32.mrf.mxu1 }
 0x32c   :  { %v1095_v9 = vadd.f32 %v1094_v25, %v1068_v7 }
 0x331   :  { %v1117_v28 = vpop.f32.mrf.mxu3 }
 0x332   :  { %v1118_v21 = vadd.f32 %v1117_v28, %v1095_v9 }
 0x334   :  { %v1141_v12 = vadd.f32 %v1140_v10, %v1118_v21 }
 0x36b   :  { %v1097_v6 = vpop.f32.mrf.mxu1 }
 0x36c   :  { %v1098_v15 = vadd.f32 %v1097_v6, %v1068_v7 }
 0x371   :  { %v1120_v8 = vpop.f32.mrf.mxu3 }
 0x372   :  { %v1143_v16 = vpop.f32.mrf.mxu0  ;;  %v1121_v1 = vadd.f32 %v1120_v8, %v1098_v15 }
 0x373   :  { %v1186_v11 = vpop.f32.mrf.mxu1 }
 0x374   :  { %v1144_v27 = vadd.f32 %v1143_v16, %v1121_v1 }
 0x379   :  { %v1163_v13 = vpop.f32.mrf.mxu2 }
 0x37a   :  { %v1164_v2 = vadd.f32 %v1163_v13, %v1141_v12  ;;  %v1209_v52 = vpop.f32.mrf.mxu3  ;;  %v1255_v41 = vpop.f32.mrf.mxu0 }
 0x37b   :  { %v1189_v56 = vpop.f32.mrf.mxu1  ;;  %v1210_v14 = vadd.f32 %v1209_v52, %v1069_v24 }
 0x37c   :  { %v1187_v18 = vadd.f32 %v1186_v11, %v1164_v2 }
 0x37e   :  { %v1311_v20 = vrot.slane %v1187_v18, 1 }
 0x380   :  { %v1319_v29 = vmax.f32 %v1187_v18, %v1311_v20 }
 0x381   :  { %v1166_v30 = vpop.f32.mrf.mxu2 }
 0x382   :  { %v1167_v31 = vadd.f32 %v1166_v30, %v1144_v27  ;;  %v1212_v32 = vpop.f32.mrf.mxu3  ;;  %v1327_v34 = vrot.slane %v1319_v29, 1  ;;  %v1335_v22 = vrot.slane %v1319_v29, 2  ;;  %v1343_v38 = vrot.slane %v1319_v29, 3  ;;  %v1258_v60 = vpop.f32.mrf.mxu0  ;;  %v1489_v27 = vld [vmem:[%s3017_s5 + $0x138] sm:$0xff] }
 0x383   :  { %v1232_v35 = vpop.f32.mrf.mxu1  ;;  %v1213_v45 = vadd.f32 %v1212_v32, %v1069_v24  ;;  %1545 = vmatpush.msrb.mxu0 %v1489_v27  ;;  %v1465_v30 = vld [vmem:[%s3017_s5 + $0x78] sm:$0xff]  ;;  %v1468_v27 = vld [vmem:[%s3017_s5 + $0x90] sm:$0xff] }
 0x384   :  { %v1190_v36 = vadd.f32 %v1189_v56, %v1167_v31  ;;  %v1233_v37 = vadd.f32 %v1232_v35, %v1210_v14  ;;  %v1351_v39 = vsel %vm3028_vm10, %v1319_v29, %v1327_v34  ;;  %vm3038_vm10 = vmmov %vm3032_vm0  ;;  %v1488_v29 = vld [vmem:[%s3017_s5 + $0x130] sm:$0xff]  ;;  %v1487_v14 = vld [vmem:[%s3017_s5 + $0x128] sm:$0xff]  ;;  %1497 = vmatpush.msra.mxu1 %v1465_v30 }
 0x385   :  { %v1355_v49 = vsel %vm3029_vm12, %v1351_v39, %v1335_v22  ;;  %vm3039_vm12 = vmmov %vm3033_vm1  ;;  %v1464_v31 = vld [vmem:[%s3017_s5 + $0x70] sm:$0xff]  ;;  %v1481_v32 = vld [vmem:[%s3017_s5 + $0xf8] sm:$0xff]  ;;  %1546 = vmatpush.msrb.mxu0 %v1488_v29 }
 0x386   :  { %v1313_v40 = vrot.slane %v1190_v36, 1  ;;  %v1359_v42 = vsel %vm3030_vm14, %v1355_v49, %v1343_v38  ;;  %v1256_v44 = vadd.f32 %v1255_v41, %v1233_v37  ;;  %1517 = vmatpush.msra.mxu3 %v1481_v32  ;;  %v1463_v34 = vld [vmem:[%s3017_s5 + $0x68] sm:$0xff]  ;;  %v1480_v22 = vld [vmem:[%s3017_s5 + $0xf0] sm:$0xff]  ;;  %v1486_v37 = vld [vmem:[%s3017_s5 + $0x120] sm:$0xff]  ;;  %1498 = vmatpush.msra.mxu1 %v1464_v31  ;;  %vm1426_vm14 = vcmask 1041409  }
 0x387   :  { %1365 = vrot.lane.b32.xlu0 %v1359_v42, %s1739_s27  ;;  %v1479_v38 = vld [vmem:[%s3017_s5 + $0xe8] sm:$0xff]  ;;  %1547 = vmatpush.msrb.mxu0 %v1487_v14  ;;  %v1462_v39 = vld [vmem:[%s3017_s5 + $0x60] sm:$0xff]  ;;  %v1485_v49 = vld [vmem:[%s3017_s5 + $0x118] sm:$0xff] }
 0x388   :  { %v1321_v43 = vmax.f32 %v1190_v36, %v1313_v40  ;;  %1518 = vmatpush.msra.mxu3 %v1480_v22  ;;  %1499 = vmatpush.msra.mxu1 %v1463_v34  ;;  %v1484_v40 = vld [vmem:[%s3017_s5 + $0x110] sm:$0xff]  ;;  %v1450_v29 = vld [vmem:[%s3017_s5] sm:$0xff]  ;;  %v1467_v30 = vld [vmem:[%s3017_s5 + $0x88] sm:$0xff] }
 0x389   :  { %v1278_v17 = vpop.f32.mrf.mxu2  ;;  %1548 = vmatpush.msrb.mxu0 %v1486_v37  ;;  %v1466_v14 = vld [vmem:[%s3017_s5 + $0x80] sm:$0xff]  ;;  %v1564_v37 = vld [vmem:[%s3019_s7 + $0x30] sm:$0x3] }
 0x38a   :  { %v1279_v47 = vadd.f32 %v1278_v17, %v1256_v44  ;;  %v1301_v48 = vpop.f32.mrf.mxu3  ;;  %v1329_v50 = vrot.slane %v1321_v43, 1  ;;  %v1337_v51 = vrot.slane %v1321_v43, 2  ;;  %v1345_v23 = vrot.slane %v1321_v43, 3  ;;  %1519 = vmatpush.msra.mxu3 %v1479_v38  ;;  %1500 = vmatpush.msra.mxu1 %v1462_v39  ;;  %v1563_v38 = vld [vmem:[%s3019_s7 + $0x28] sm:$0xff]  ;;  %v1562_v39 = vld [vmem:[%s3019_s7 + $0x20] sm:$0xff] }
 0x38b   :  { %v1235_v53 = vpop.f32.mrf.mxu1  ;;  %1549 = vmatpush.msrb.mxu0 %v1485_v49  ;;  %v1560_v49 = vld [vmem:[%s3019_s7 + $0x10] sm:$0xff] }
 0x38c   :  { %v1302_v54 = vadd.f32 %v1301_v48, %v1279_v47  ;;  %v1236_v55 = vadd.f32 %v1235_v53, %v1213_v45  ;;  %v1353_v57 = vsel %vm3031_vm7, %v1321_v43, %v1329_v50  ;;  %v1482_v43 = vld [vmem:[%s3017_s5 + $0x100] sm:$0xff] }
 0x38d   :  { %v1357_v58 = vsel %vm3032_vm0, %v1353_v57, %v1337_v51  ;;  %1550 = vmatpush.msrb.mxu0 %v1484_v40  ;;  %v1559_v40 = vld [vmem:[%s3019_s7 + $0x8] sm:$0xff] }
 0x38e   :  { %v1312_v33 = vrot.slane %v1302_v54, 1  ;;  %v1361_v59 = vsel %vm3033_vm1, %v1357_v58, %v1345_v23  ;;  %v1259_v46 = vadd.f32 %v1258_v60, %v1236_v55 }
 0x38f   :  { %1367 = vrot.lane.b32.xlu1 %v1361_v59, %s1739_s27 }
 0x390   :  { %v1320_v61 = vmax.f32 %v1302_v54, %v1312_v33 }
 0x391   :  { %v1281_v62 = vpop.f32.mrf.mxu2 }
 0x392   :  { %v1328_v63 = vrot.slane %v1320_v61, 1  ;;  %v1282_v3 = vadd.f32 %v1281_v62, %v1259_v46  ;;  %v1336_v0 = vrot.slane %v1320_v61, 2  ;;  %v1304_v4 = vpop.f32.mrf.mxu3  ;;  %v1344_v19 = vrot.slane %v1320_v61, 3 }
 0x394   :  { %v1305_v5 = vadd.f32 %v1304_v4, %v1282_v3  ;;  %v1352_v25 = vsel %vm3034_vm2, %v1320_v61, %v1328_v63 }
 0x395   :  { %v1356_v28 = vsel %vm3035_vm3, %v1352_v25, %v1336_v0  ;;  %v1461_v25 = vld [vmem:[%s3017_s5 + $0x58] sm:$0xff] }
 0x396   :  { %v1314_v26 = vrot.slane %v1305_v5, 1  ;;  %v1360_v6 = vsel %vm3036_vm8, %v1356_v28, %v1344_v19  ;;  %1501 = vmatpush.msra.mxu1 %v1461_v25  ;;  %v1478_v28 = vld [vmem:[%s3017_s5 + $0xe0] sm:$0xff] }
 0x397   :  { %1375 = vrot.lane.b32.xlu2 %v1360_v6, %s1739_s27  ;;  %1520 = vmatpush.msra.mxu3 %v1478_v28 }
 0x398   :  { %v1322_v7 = vmax.f32 %v1305_v5, %v1314_v26  ;;  %v1460_v26 = vld [vmem:[%s3017_s5 + $0x50] sm:$0xff] }
 0x399   :  { %1502 = vmatpush.msra.mxu1 %v1460_v26 }
 0x39a   :  { %v1330_v8 = vrot.slane %v1322_v7, 1  ;;  %v1338_v9 = vrot.slane %v1322_v7, 2  ;;  %v1346_v10 = vrot.slane %v1322_v7, 3 }
 0x39c   :  { %v1354_v11 = vsel %vm3037_vm9, %v1322_v7, %v1330_v8  ;;  %v1459_v7 = vld [vmem:[%s3017_s5 + $0x48] sm:$0xff]  ;;  %v1476_v8 = vld [vmem:[%s3017_s5 + $0xd0] sm:$0xff] }
 0x39d   :  { %v1358_v21 = vsel %vm3038_vm10, %v1354_v11, %v1338_v9  ;;  %v1458_v9 = vld [vmem:[%s3017_s5 + $0x40] sm:$0xff]  ;;  %1503 = vmatpush.msra.mxu1 %v1459_v7  ;;  %v1457_v11 = vld [vmem:[%s3017_s5 + $0x38] sm:$0xff] }
 0x39e   :  { %v1362_v12 = vsel %vm3039_vm12, %v1358_v21, %v1346_v10  ;;  %v1475_v10 = vld [vmem:[%s3017_s5 + $0xc8] sm:$0xff]  ;;  %v1474_v21 = vld [vmem:[%s3017_s5 + $0xc0] sm:$0xff] }
 0x39f   :  { %1377 = vrot.lane.b32.xlu0 %v1362_v12, %s1739_s27  ;;  %1504 = vmatpush.msra.mxu1 %v1458_v9 }
 0x3a1   :  { %1505 = vmatpush.msra.mxu1 %v1457_v11 }
 0x3f1   :  { %v1376_v2 = vpop.permute.xlu2 %1375 }
 0x3f2   :  { %v1382_v16 = vmax.f32 %v1360_v6, %v1376_v2  ;;  %v1381_v1 = vmax.f32 %v1359_v42, %v1376_v2  ;;  %v1477_v6 = vld [vmem:[%s3017_s5 + $0xd8] sm:$0xff]  ;;  %v1472_v2 = vld [vmem:[%s3017_s5 + $0xb0] sm:$0xff] }
 0x3f3   :  { %1521 = vmatpush.msra.mxu3 %v1477_v6 }
 0x3f5   :  { %1522 = vmatpush.msra.mxu3 %v1476_v8 }
 0x3f7   :  { %1523 = vmatpush.msra.mxu3 %v1475_v10 }
 0x3f9   :  { %v1366_v13 = vpop.permute.xlu0 %1365  ;;  %1524 = vmatpush.msra.mxu3 %v1474_v21 }
 0x3fa   :  { %v1371_v15 = vmax.f32 %v1359_v42, %v1366_v13  ;;  %v1483_v42 = vld [vmem:[%s3017_s5 + $0x108] sm:$0xff]  ;;  %v1473_v13 = vld [vmem:[%s3017_s5 + $0xb8] sm:$0xff] }
 0x3fb   :  { %1551 = vmatpush.msrb.mxu0 %v1483_v42  ;;  %1525 = vmatpush.msra.mxu3 %v1473_v13  ;;  %v1558_v42 = vld [vmem:[%s3019_s7] sm:$0xff] }
 0x3fc   :  { %1393 = vrot.lane.b32.xlu0 %v1371_v15, %s1741_s29  ;;  %1387 = vrot.lane.b32.xlu1 %v1371_v15, %s1739_s27 }
 0x3fd   :  { %1552 = vmatpush.msrb.mxu0 %v1482_v43  ;;  %1526 = vmatpush.msra.mxu3 %v1472_v2  ;;  %v1701_v43 = vld [vmem:[%s3018_s6] ss:$0 sm:$0xff]  ;;  %s1752_s6 = smov [#allocation2]  }
 0x401   :  { %v1368_v52 = vpop.permute.xlu1 %1367 }
 0x402   :  { %v1372_v56 = vmax.f32 %v1361_v59, %v1368_v52  ;;  %v1454_v52 = vld [vmem:[%s3017_s5 + $0x20] sm:$0xff] }
 0x404   :  { %1405 = vrot.lane.b32.xlu0 %v1382_v16, %s1742_s30  ;;  %1395 = vrot.lane.b32.xlu1 %v1372_v56, %s1741_s29  ;;  %s1750_s29 = smov 80   ;;  %v1471_v16 = vld [vmem:[%s3017_s5 + $0xa8] sm:$0xff] }
 0x405   :  { %1389 = vrot.lane.b32.xlu2 %v1372_v56, %s1739_s27  ;;  %1527 = vmatpush.msra.mxu3 %v1471_v16 }
 0x40d   :  { %1403 = vrot.lane.b32.xlu2 %v1381_v1, %s1742_s30  ;;  %v1470_v1 = vld [vmem:[%s3017_s5 + $0xa0] sm:$0xff] }
 0x40e   :  { %1528 = vmatpush.msra.mxu3 %v1470_v1 }
 0x411   :  { %v1378_v18 = vpop.permute.xlu0 %1377 }
 0x412   :  { %v1383_v20 = vmax.f32 %v1361_v59, %v1378_v18  ;;  %v1384_v24 = vmax.f32 %v1362_v12, %v1378_v18  ;;  %v1456_v12 = vld [vmem:[%s3017_s5 + $0x30] sm:$0xff] }
 0x413   :  { %1506 = vmatpush.msra.mxu1 %v1456_v12  ;;  %v1452_v18 = vld [vmem:[%s3017_s5 + $0x10] sm:$0xff] }
 0x414   :  { %1407 = vrot.lane.b32.xlu1 %v1383_v20, %s1742_s30  ;;  %v1469_v20 = vld [vmem:[%s3017_s5 + $0x98] sm:$0xff] }
 0x415   :  { %1409 = vrot.lane.b32.xlu2 %v1384_v24, %s1742_s30  ;;  %v1451_v24 = vld [vmem:[%s3017_s5 + $0x8] sm:$0xff]  ;;  %1529 = vmatpush.msra.mxu3 %v1469_v20 }
 0x417   :  { %1530 = vmatpush.msra.mxu3 %v1468_v27 }
 0x419   :  { %1531 = vmatpush.msra.mxu3 %v1467_v30 }
 0x41b   :  { %1532 = vmatpush.msra.mxu3 %v1466_v14 }
 0x45f   :  { %v1390_v35 = vpop.permute.xlu2 %1389 }
 0x460   :  { %v1416_v54 = vsel %vm799_vm13, %v1372_v56, %v1390_v35  ;;  %v1453_v56 = vld [vmem:[%s3017_s5 + $0x18] sm:$0xff] }
 0x467   :  { %v1404_v44 = vpop.permute.xlu2 %1403 }
 0x46e   :  { %v1394_v36 = vpop.permute.xlu0 %1393  ;;  %v1388_v41 = vpop.permute.xlu1 %1387 }
 0x46f   :  { %v1415_v45 = vsel %vm799_vm13, %v1371_v15, %v1388_v41  ;;  %v1410_v55 = vpop.permute.xlu2 %1409  ;;  %v1455_v15 = vld [vmem:[%s3017_s5 + $0x28] sm:$0xff]  ;;  %vm1494_vm13 = vcmask 523264   ;;  %v1561_v41 = vld [vmem:[%s3019_s7 + $0x18] sm:$0xff]  ;;  %s1614_s7 = sshll.u32 %s1752_s6, 4  ;;  %s1615_s7 = int_to_ptr.vmem [resolvable:$true] %s1614_s7 }
 0x470   :  { %v1417_v50 = vsel %vm809_vm15, %v1415_v45, %v1394_v36  ;;  %1507 = vmatpush.msra.mxu1 %v1455_v15 }
 0x472   :  { %1508 = vmatpush.msra.mxu1 %v1454_v52 }
 0x474   :  { %1509 = vmatpush.msra.mxu1 %v1453_v56 }
 0x476   :  { %v1406_v17 = vpop.permute.xlu0 %1405  ;;  %v1396_v47 = vpop.permute.xlu1 %1395  ;;  %1510 = vmatpush.msra.mxu1 %v1452_v18 }
 0x477   :  { %v1411_v48 = vsel %vm725_vm4, %v1404_v44, %v1406_v17  ;;  %v1418_v57 = vsel %vm809_vm15, %v1416_v54, %v1396_v47  ;;  %vm1447_vm15 = vcmask 261120  }
 0x478   :  { %v1419_v51 = vsel %vm819_vm6, %v1417_v50, %v1411_v48  ;;  %1511 = vmatpush.msra.mxu1 %v1451_v24 }
 0x479   :  { %v1421_v53 = vmax.f32 %v1419_v51, 0.0 }
 0x47a   :  { %1512 = vmatpush.msra.mxu1 %v1450_v29 }
 0x47b   :  { %v1429_v60 = vrot.slane %v1421_v53, 1  ;;  %v1440_v61 = vrot.slane %v1421_v53, 3  ;;  %v1434_v46 = vrot.slane %v1421_v53, 2 }
 0x486   :  { %v1408_v23 = vpop.permute.xlu1 %1407 }
 0x487   :  { %v1412_v58 = vsel %vm725_vm4, %v1408_v23, %v1410_v55  ;;  %vm3040_vm4 = vcmask 916480  }
 0x488   :  { %v1420_v33 = vsel %vm819_vm6, %v1418_v57, %v1412_v58  ;;  %vm3041_vm6 = vmmov %vm3032_vm0 }
 0x489   :  { %v1422_v59 = vmax.f32 %v1420_v33, 0.0  ;;  %1644 = vmatpush.msk.msrb.mxu2 %vm3041_vm6, %v1564_v37 }
 0x48b   :  { %v1430_v62 = vsel %vm1426_vm14, %v1422_v59, %v1429_v60  ;;  %v1441_v63 = vrot.slane %v1422_v59, 2  ;;  %v1435_v3 = vrot.slane %v1422_v59, 1  ;;  %v1425_v0 = vrot.slane %v1422_v59, 7  ;;  %1585 = vmatpush.msrb.mxu2 %v1563_v38 }
 0x48c   :  { %1431 = vrot.lane.b32.xlu0 %v1430_v62, %s1750_s29 }
 0x48d   :  { %v1442_v4 = vsel %vm1426_vm14, %v1441_v63, %v1440_v61  ;;  %v1436_v5 = vsel %vm1426_vm14, %v1435_v3, %v1434_v46  ;;  %v1427_v19 = vsel %vm1426_vm14, %v1425_v0, %v1421_v53  ;;  %1586 = vmatpush.msrb.mxu2 %v1562_v39  ;;  %v1702_v53 = vld [vmem:[%s3020_s8] ss:$0 sm:$0xff] }
 0x48e   :  { %1443 = vrot.lane.b32.xlu2 %v1442_v4, %s1735_s23  ;;  %1437 = vrot.lane.b32.xlu1 %v1436_v5, %s1751_s0 }
 0x48f   :  { %1587 = vmatpush.msrb.mxu2 %v1561_v41 }
 0x491   :  { %1588 = vmatpush.msrb.mxu2 %v1560_v49 }
 0x493   :  { %1589 = vmatpush.msrb.mxu2 %v1559_v40 }
 0x495   :  { %1590 = vmatpush.msrb.mxu2 %v1558_v42 }
 0x4e8   :  { %v1444_v31 = vpop.permute.xlu2 %1443 }
 0x4e9   :  { %1643 = vmatmul.msk.f32.vlgmr.msrb.gmra.mxu0 %vm1494_vm13, %v1444_v31 }
 0x4fe   :  { %v1432_v32 = vpop.permute.xlu0 %1431 }
 0x4ff   :  { %v1446_v34 = vsel %vm829_vm11, %v1427_v19, %v1432_v32  ;;  %vm1595_vm11 = vcmask 74752  }
 0x500   :  { %v1438_v22 = vpop.permute.xlu1 %1437  ;;  %1513 = vmatmul.f32.vlgmr.msra.gmra.mxu1 %v1446_v34 }
 0x501   :  { %v1448_v35 = vsel %vm1447_vm15, %v1432_v32, %v1438_v22 }
 0x502   :  { %v1449_v36 = vsel %vm3040_vm4, %v1448_v35, %v1444_v31 }
 0x503   :  { %1533 = vmatmul.f32.vlgmr.msra.gmra.mxu3 %v1449_v36 }
 0x566   :  { %v1554_v48 = vpop.f32.mrf.mxu0 }
 0x57d   :  { %v1514_v44 = vpop.f32.mrf.mxu1 }
 0x57e   :  { %v1515_v17 = vadd.f32 %v1701_v43, %v1514_v44 }
 0x586   :  { %v1534_v45 = vpop.f32.mrf.mxu3 }
 0x587   :  { %v1535_v47 = vadd.f32 %v1534_v45, %v1515_v17 }
 0x589   :  { %v1555_v50 = vadd.f32 %v1554_v48, %v1535_v47 }
 0x58b   :  { %v1557_v51 = vmax.f32 %v1555_v50, 0.0 }
 0x58d   :  { %1645 = vmatmul.msk.f32.vlgmr.msrb.gmra.mxu2 %vm814_vm5, %v1557_v51 }
 0x610   :  { %v1592_v54 = vpop.f32.mrf.mxu2 }
 0x611   :  { %v1593_v55 = vadd.f32 %v1702_v53, %v1592_v54 }
 0x613   :  { %v1596_v23 = vsel %vm1595_vm11, %v1593_v55, -inf }
 0x614   :  { %1597 = vmax.xlane.f32.xlu0 %v1596_v23 }
 0x687   :  { %v1598_v57 = vpop.xlane.xlu0 %1597 }
 0x688   :  { %v1599_v58 = vsub.f32 %v1593_v55, %v1598_v57 }
 0x68a   :  { %v1600_v33 = vmul.f32 1.442695, %v1599_v58 }
 0x68c   :  { %1703 = vpow2.f32 %v1600_v33 }
 0x692   :  { %v1704_v59 = vpop.eup %1703 }
 0x693   :  { %v1602_v60 = vsel %vm1595_vm11, %v1704_v59, 0.0 }
 0x694   :  { %1603 = vadd.xlane.f32.xlu1 %v1602_v60 }
 0x707   :  { %v1604_v61 = vpop.xlane.xlu1 %1603 }
 0x708   :  { %1705 = vlog2.f32 %v1604_v61 }
 0x70e   :  { %v1706_v46 = vpop.eup %1705 }
 0x70f   :  { %v1606_v62 = vmul.f32 0.6931472, %v1706_v46 }
 0x711   :  { %v1607_v63 = vsub.f32 %v1599_v58, %v1606_v62 }
 0x713   :  { %1608 = vst.msk [vmem:[#allocation2] sm:$0x3] %vm1595_vm11, %v1607_v63 }
 0x714   :  { %1619 = dma.vmem_to_hbm [thread:$0]  %s1615_s7, 32, %s1617_s22, [#allocation3]  }
 0x715   :  { %1731 = dma.done.wait [#allocation3], 32  }
 0x716   :  { %1732 = vsyncadd [#allocation3], 4294967264 }
 0x717   :  { %1624 = vsyncpa [#allocation3], 1 }

</bundles_post_ra>
